<compile_context>
chip_gen: v5e
topology: v5e:2x2
jax: 0.10.0
libtpu: 0.0.40
codegen_flags: <defaults>
</compile_context>

<pallas_src>
import functools

import jax
import jax.numpy as jnp
from jax import lax
from jax.experimental import pallas as pl
from jax.experimental.pallas import tpu as pltpu


_TRANS_B = (((1,), (1,)), ((), ()))   # contract dim 1 of both operands: A @ B.T


def _layernorm(v, w, b, eps):
    mu = jnp.mean(v, axis=-1, keepdims=True)
    var = jnp.mean((v - mu) ** 2, axis=-1, keepdims=True)
    return (v - mu) * jax.lax.rsqrt(var + eps) * w + b


def _gelu_tanh(u):
    # TODO(synk): PyTorch nn.GELU default is the exact erf GELU; erf has no
    # guaranteed Mosaic lowering, so the tanh approximation is used (~1e-3 abs diff).
    c = 0.7978845608028654  # sqrt(2/pi)
    return 0.5 * u * (1.0 + jnp.tanh(c * (u + 0.044715 * u * u * u)))


def block_kernel(x_ref, wq_ref, wk_ref, wv_ref, wqk_ref, wproj_ref, bproj_ref,
                 ln1w_ref, ln1b_ref, ln2w_ref, ln2b_ref,
                 w1_ref, b1_ref, w2_ref, b2_ref,
                 y_ref, mask_ref,
                 pv_scratch,
                 *, bt, seq_len, num_heads, scale, cur_depth, eps):
    N = seq_len
    C = x_ref.shape[1]
    hd = C // num_heads

    x = x_ref[...]                                   # (bt*N, C) f32
    xn = _layernorm(x, ln1w_ref[...], ln1b_ref[...], eps)
    xn_b = xn.astype(jnp.bfloat16)                   # single cast at matmul boundary

    # ---------- mask (per batch item) ----------
    # mean over heads of the last-query-row pre-softmax scores collapses to a
    # single full-C contraction:  (1/H) * xn[last] @ (Wq Wk^T) @ xn^T,
    # with Wq Wk^T precomputed in the wrapper.  Two tiny matmuls per item.
    wqk = wqk_ref[...]                               # (C, C) bf16
    masks = []
    for i in range(bt):                              # static unroll over packed items
        xn_i = xn_b[i * N:(i + 1) * N, :]            # sublane row slice
        row = jnp.dot(xn_i[N - 1:N, :], wqk,
                      preferred_element_type=jnp.float32)             # (1, C)
        logits = lax.dot_general(row.astype(jnp.bfloat16), xn_i, _TRANS_B,
                                 preferred_element_type=jnp.float32)  # (1, N)
        m_i = jax.nn.sigmoid(logits * (scale / num_heads))
        masks.append(m_i)
        mask_ref[i:i + 1, :] = m_i
    # TODO(synk): padding the mask lane dim to a multiple of 128 would make this
    # store fully lane-dense; negligible next to the (bt*N, C) slabs.

    # ---------- per-head attention ----------
    # Head-major weights (H, hd, C): per-head access is leading-axis indexing,
    # the QKV contraction stays full-C deep, and no lane-offset slices of
    # q/k/v are needed.  Each head's pv is written into its column block of a
    # single (bt*N, C) scratch so the output projection is ONE full-C matmul.
    for h in range(num_heads):                       # static unroll (num_heads small)
        q_h = lax.dot_general(xn_b, wq_ref[h], _TRANS_B,
                              preferred_element_type=jnp.float32).astype(jnp.bfloat16)
        k_h = lax.dot_general(xn_b, wk_ref[h], _TRANS_B,
                              preferred_element_type=jnp.float32).astype(jnp.bfloat16)
        v_h = lax.dot_general(xn_b, wv_ref[h], _TRANS_B,
                              preferred_element_type=jnp.float32).astype(jnp.bfloat16)
        for i in range(bt):
            lo = i * N
            qi = q_h[lo:lo + N, :]
            ki = k_h[lo:lo + N, :]
            vi = v_h[lo:lo + N, :]
            s = lax.dot_general(qi, ki, _TRANS_B,
                                preferred_element_type=jnp.float32) * scale  # (N, N)
            s = s - jnp.max(s, axis=-1, keepdims=True)
            p = jnp.exp(s)                           # unnormalized probs (EUP)
            rowsum = jnp.sum(p, axis=-1, keepdims=True)   # (N, 1)
            if cur_depth >= 9:                       # static (compile-time) branch
                p = p * masks[i]                     # broadcast over query rows
            pv = jnp.dot(p.astype(jnp.bfloat16), vi,
                         preferred_element_type=jnp.float32)             # (N, hd)
            # deferred softmax normalization: per-row scalar applied to the small
            # pv, reciprocal on the EUP slot instead of an (N,N) VALU divide.
            pv = pv * pl.reciprocal(rowsum, approx=True)
            pv_scratch[lo:lo + N, h * hd:(h + 1) * hd] = pv

    # single full-depth output projection
    o = jnp.dot(pv_scratch[...].astype(jnp.bfloat16), wproj_ref[...],
                preferred_element_type=jnp.float32)                      # (bt*N, C)
    x1 = x + o + bproj_ref[...]                      # first residual (+ proj bias)

    # ---------- MLP on norm2(x1) ----------
    xn2 = _layernorm(x1, ln2w_ref[...], ln2b_ref[...], eps).astype(jnp.bfloat16)
    h1 = jnp.dot(xn2, w1_ref[...], preferred_element_type=jnp.float32) + b1_ref[...]
    h1 = _gelu_tanh(h1)                              # f32 elementwise
    h2 = jnp.dot(h1.astype(jnp.bfloat16), w2_ref[...],
                 preferred_element_type=jnp.float32) + b2_ref[...]
    y_ref[...] = x1 + h2                             # second residual


def _pick_bt(batch, seq_len):
    """Pack multiple batch items per grid step when one (N, C) slab is small.

    Larger per-step slabs fill vreg sublanes / MXU M-dim and amortize the
    ~0.35 us per-grid-step overhead; at ViT sizes (N ~ 200) this stays 1.
    TODO(synk): on v7x (2 TensorCores/chip) cap bt at batch//2 when batch >= 2
    so both cores get parallel grid steps.
    """
    bt = 1
    for cand in range(1, batch + 1):
        if batch % cand == 0 and cand * seq_len <= 256:
            bt = cand
    return bt


def block_forward(x, params, *, num_heads, cur_depth, eps=1e-5, bt=None):
    B, N, C = x.shape
    hidden = params["w1"].shape[1]
    hd = C // num_heads
    scale = hd ** -0.5
    if bt is None:
        bt = _pick_bt(B, N)
    assert B % bt == 0
    grid = (B // bt,)

    kernel = functools.partial(block_kernel, bt=bt, seq_len=N, num_heads=num_heads,
                               scale=scale, cur_depth=cur_depth, eps=eps)

    bf16 = jnp.bfloat16

    # Head-major (H, hd, C) qkv weights: dense C lane dim, leading-axis per-head
    # indexing inside the kernel; q_h = xn @ wq_h^T via a trans_b contraction.
    def head_major(w):
        return w.reshape(C, num_heads, hd).transpose(1, 2, 0).astype(bf16)

    wq = head_major(params["wq"])
    wk = head_major(params["wk"])
    wv = head_major(params["wv"])
    # Wq @ Wk^T lets the kernel compute the head-mean last-row attention logits
    # (the sigmoid mask) with one tiny full-C contraction.
    wqk = (params["wq"] @ params["wk"].T).astype(bf16)
    wproj = params["wproj"].astype(bf16)
    w1 = params["w1"].astype(bf16)
    w2 = params["w2"].astype(bf16)

    x_flat = x.reshape(B * N, C)      # lane-dense 2-D slabs, no in-kernel reshape

    def full(shape):
        n = len(shape)
        return pl.BlockSpec(shape, lambda b: (0,) * n)
    # TODO(synk): on v7x (64 MiB VMEM/TC) mark these grid-invariant weight specs
    # single-buffered (pipeline_mode=pl.Buffered(1)) to halve weight VMEM; left
    # at the default double-buffering here for portability.

    # Per-generation VMEM budget instead of a hard-coded cap (96 MiB on
    # v5e/v6e's 128 MiB, 48 MiB on v7x's 64 MiB per core).
    try:
        info = pltpu.get_tpu_info()
        vmem_cap = int(getattr(info, "vmem_capacity_bytes", 64 * 1024 * 1024))
    except Exception:
        vmem_cap = 64 * 1024 * 1024
    vmem_limit = (vmem_cap * 3) // 4

    # Advisory cost estimate so XLA schedules work around the custom call.
    flops = B * (2 * N * C * (4 * C + 2 * hidden) + 4 * N * N * C)
    transcendentals = B * (num_heads * N * N + N * hidden + num_heads * N + N)
    bytes_accessed = ((2 * B * N * C + B * N) * 4              # x, y, mask (f32)
                      + (5 * C * C + 2 * C * hidden) * 2       # bf16 weights (+wqk)
                      + (6 * C + hidden) * 4)                  # biases / LN params

    y, mask = pl.pallas_call(
        kernel,
        out_shape=(jax.ShapeDtypeStruct((B * N, C), jnp.float32),
                   jax.ShapeDtypeStruct((B, N), jnp.float32)),
        grid=grid,
        in_specs=[
            pl.BlockSpec((bt * N, C), lambda b: (b, 0)),           # x (flattened rows)
            full((num_heads, hd, C)),                              # wq (head-major)
            full((num_heads, hd, C)),                              # wk
            full((num_heads, hd, C)),                              # wv
            full((C, C)),                                          # wq @ wk^T (mask path)
            full((C, C)),                                          # proj weight
            full((1, C)),                                          # proj bias
            full((1, C)), full((1, C)),                            # ln1 weight / bias
            full((1, C)), full((1, C)),                            # ln2 weight / bias
            full((C, hidden)), full((1, hidden)),                  # fc1 weight / bias
            full((hidden, C)), full((1, C)),                       # fc2 weight / bias
        ],
        out_specs=(pl.BlockSpec((bt * N, C), lambda b: (b, 0)),
                   pl.BlockSpec((bt, N), lambda b: (b, 0))),
        scratch_shapes=[pltpu.VMEM((bt * N, C), jnp.float32)],     # per-head pv slab
        compiler_params=pltpu.CompilerParams(
            dimension_semantics=("parallel",),
            vmem_limit_bytes=int(vmem_limit)),
        cost_estimate=pl.CostEstimate(flops=int(flops),
                                      transcendentals=int(transcendentals),
                                      bytes_accessed=int(bytes_accessed)),
    )(x_flat, wq, wk, wv, wqk, wproj, params["bproj"],
      params["ln1w"], params["ln1b"], params["ln2w"], params["ln2b"],
      w1, params["b1"], w2, params["b2"])
    return y.reshape(B, N, C), mask.reshape(B, 1, 1, N)


def block_reference(x, params, *, num_heads, cur_depth, eps=1e-5):
    """Plain-JAX (f32) mirror of the PyTorch Block.forward (same GELU approx)."""
    B, N, C = x.shape
    hd = C // num_heads
    scale = hd ** -0.5

    def ln(v, w, b):
        mu = v.mean(-1, keepdims=True)
        var = ((v - mu) ** 2).mean(-1, keepdims=True)
        return (v - mu) * jax.lax.rsqrt(var + eps) * w + b

    def heads(t):
        return t.reshape(B, N, num_heads, hd).transpose(0, 2, 1, 3)

    xn = ln(x, params["ln1w"][0], params["ln1b"][0])
    q = heads(xn @ params["wq"])
    k = heads(xn @ params["wk"])
    v = heads(xn @ params["wv"])
    attn = jnp.einsum("bhnd,bhmd->bhnm", q, k) * scale
    mask = jax.nn.sigmoid(attn[:, :, -1, :][:, :, None, :].mean(axis=1)[:, None])
    p = jax.nn.softmax(attn, axis=-1)
    if cur_depth >= 9:
        p = p * mask
    o = jnp.einsum("bhnm,bhmd->bhnd", p, v).transpose(0, 2, 1, 3).reshape(B, N, C)
    o = o @ params["wproj"] + params["bproj"][0]
    x1 = x + o
    xn2 = ln(x1, params["ln2w"][0], params["ln2b"][0])
    h1 = _gelu_tanh(xn2 @ params["w1"] + params["b1"][0])
    h2 = h1 @ params["w2"] + params["b2"][0]
    return x1 + h2, mask


if __name__ == "__main__":
    B, N, C = 2, 8, 32
    num_heads = 4
    mlp_ratio = 4.0
    hidden = int(C * mlp_ratio)
    cur_depth = 10  # exercises the mask-multiply path (cur_depth >= 9)

    key = jax.random.PRNGKey(0)
    ks = jax.random.split(key, 10)
    params = {
        "wq":    0.02 * jax.random.normal(ks[0], (C, C), jnp.float32),
        "wk":    0.02 * jax.random.normal(ks[1], (C, C), jnp.float32),
        "wv":    0.02 * jax.random.normal(ks[2], (C, C), jnp.float32),
        "wproj": 0.02 * jax.random.normal(ks[3], (C, C), jnp.float32),
        "bproj": 0.02 * jax.random.normal(ks[4], (1, C), jnp.float32),
        "ln1w":  jnp.ones((1, C), jnp.float32),
        "ln1b":  jnp.zeros((1, C), jnp.float32),
        "ln2w":  jnp.ones((1, C), jnp.float32),
        "ln2b":  jnp.zeros((1, C), jnp.float32),
        "w1":    0.02 * jax.random.normal(ks[5], (C, hidden), jnp.float32),
        "b1":    0.02 * jax.random.normal(ks[6], (1, hidden), jnp.float32),
        "w2":    0.02 * jax.random.normal(ks[7], (hidden, C), jnp.float32),
        "b2":    0.02 * jax.random.normal(ks[8], (1, C), jnp.float32),
    }
    x = jax.random.normal(ks[9], (B, N, C), jnp.float32)

    y, mask = block_forward(x, params, num_heads=num_heads, cur_depth=cur_depth)
    y, mask = jax.block_until_ready((y, mask))

    y_exp, mask_exp = block_reference(x, params, num_heads=num_heads,
                                      cur_depth=cur_depth)
    assert y.shape == (B, N, C) and mask.shape == (B, 1, 1, N)
    # Kernel uses bf16 matmul operands (f32 accumulation) and an approximate
    # EUP reciprocal; reference is pure f32, so the tolerance is loosened.
    assert jnp.allclose(y, y_exp, atol=1e-2, rtol=1e-2)
    assert jnp.allclose(mask, mask_exp, atol=1e-2, rtol=1e-2)

    print("KERNEL_OK")
</pallas_src>

<mosaic_0001>
module attributes {stable_mosaic.version = 11 : i64} {
  func.func @block_kernel(%arg0: i32, %arg1: memref<16x32xf32, #tpu.memory_space<vmem>>, %arg2: memref<4x8x32xbf16, #tpu.memory_space<vmem>>, %arg3: memref<4x8x32xbf16, #tpu.memory_space<vmem>>, %arg4: memref<4x8x32xbf16, #tpu.memory_space<vmem>>, %arg5: memref<32x32xbf16, #tpu.memory_space<vmem>>, %arg6: memref<32x32xbf16, #tpu.memory_space<vmem>>, %arg7: memref<1x32xf32, #tpu.memory_space<vmem>>, %arg8: memref<1x32xf32, #tpu.memory_space<vmem>>, %arg9: memref<1x32xf32, #tpu.memory_space<vmem>>, %arg10: memref<1x32xf32, #tpu.memory_space<vmem>>, %arg11: memref<1x32xf32, #tpu.memory_space<vmem>>, %arg12: memref<32x128xbf16, #tpu.memory_space<vmem>>, %arg13: memref<1x128xf32, #tpu.memory_space<vmem>>, %arg14: memref<128x32xbf16, #tpu.memory_space<vmem>>, %arg15: memref<1x32xf32, #tpu.memory_space<vmem>>, %arg16: memref<16x32xf32, #tpu.memory_space<vmem>>, %arg17: memref<2x8xf32, #tpu.memory_space<vmem>>, %arg18: memref<16x32xf32, #tpu.memory_space<vmem>>) attributes {dimension_semantics = [#tpu.dimension_semantics<parallel>], iteration_bounds = array<i64: 1>, scalar_prefetch = 0 : i64, scratch_operands = 1 : i64, tpu.core_type = #tpu.core_type<tc>, window_params = [{transform_indices = @transform_0, window_bounds = array<i64: 16, 32>}, {pipeline_mode = #tpu.pipeline_mode<synchronous>, transform_indices = @transform_1, window_bounds = array<i64: 4, 8, 32>}, {pipeline_mode = #tpu.pipeline_mode<synchronous>, transform_indices = @transform_2, window_bounds = array<i64: 4, 8, 32>}, {pipeline_mode = #tpu.pipeline_mode<synchronous>, transform_indices = @transform_3, window_bounds = array<i64: 4, 8, 32>}, {pipeline_mode = #tpu.pipeline_mode<synchronous>, transform_indices = @transform_4, window_bounds = array<i64: 32, 32>}, {pipeline_mode = #tpu.pipeline_mode<synchronous>, transform_indices = @transform_5, window_bounds = array<i64: 32, 32>}, {pipeline_mode = #tpu.pipeline_mode<synchronous>, transform_indices = @transform_6, window_bounds = array<i64: 1, 32>}, {pipeline_mode = #tpu.pipeline_mode<synchronous>, transform_indices = @transform_7, window_bounds = array<i64: 1, 32>}, {pipeline_mode = #tpu.pipeline_mode<synchronous>, transform_indices = @transform_8, window_bounds = array<i64: 1, 32>}, {pipeline_mode = #tpu.pipeline_mode<synchronous>, transform_indices = @transform_9, window_bounds = array<i64: 1, 32>}, {pipeline_mode = #tpu.pipeline_mode<synchronous>, transform_indices = @transform_10, window_bounds = array<i64: 1, 32>}, {pipeline_mode = #tpu.pipeline_mode<synchronous>, transform_indices = @transform_11, window_bounds = array<i64: 32, 128>}, {pipeline_mode = #tpu.pipeline_mode<synchronous>, transform_indices = @transform_12, window_bounds = array<i64: 1, 128>}, {pipeline_mode = #tpu.pipeline_mode<synchronous>, transform_indices = @transform_13, window_bounds = array<i64: 128, 32>}, {pipeline_mode = #tpu.pipeline_mode<synchronous>, transform_indices = @transform_14, window_bounds = array<i64: 1, 32>}, {transform_indices = @transform_15, window_bounds = array<i64: 16, 32>}, {transform_indices = @transform_16, window_bounds = array<i64: 2, 8>}]} {
    %c0 = arith.constant 0 : index
    %c0_0 = arith.constant 0 : index
    %0 = vector.load %arg1[%c0, %c0_0] : memref<16x32xf32, #tpu.memory_space<vmem>>, vector<16x32xf32>
    %c0_1 = arith.constant 0 : index
    %c0_2 = arith.constant 0 : index
    %1 = vector.load %arg8[%c0_1, %c0_2] : memref<1x32xf32, #tpu.memory_space<vmem>>, vector<1x32xf32>
    %c0_3 = arith.constant 0 : index
    %c0_4 = arith.constant 0 : index
    %2 = vector.load %arg9[%c0_3, %c0_4] : memref<1x32xf32, #tpu.memory_space<vmem>>, vector<1x32xf32>
    %cst = arith.constant dense<0.000000e+00> : vector<16xf32>
    %3 = vector.multi_reduction <add>, %0, %cst [1] : vector<16x32xf32> to vector<16xf32>
    %4 = vector.shape_cast %3 : vector<16xf32> to vector<16x1xf32>
    %cst_5 = arith.constant 3.200000e+01 : f32
    %5 = vector.broadcast %cst_5 : f32 to vector<16x1xf32>
    %6 = arith.divf %4, %5 : vector<16x1xf32>
    %7 = vector.broadcast %6 : vector<16x1xf32> to vector<16x32xf32>
    %8 = arith.subf %0, %7 : vector<16x32xf32>
    %9 = arith.mulf %8, %8 : vector<16x32xf32>
    %cst_6 = arith.constant dense<0.000000e+00> : vector<16xf32>
    %10 = vector.multi_reduction <add>, %9, %cst_6 [1] : vector<16x32xf32> to vector<16xf32>
    %11 = vector.shape_cast %10 : vector<16xf32> to vector<16x1xf32>
    %cst_7 = arith.constant 3.200000e+01 : f32
    %12 = vector.broadcast %cst_7 : f32 to vector<16x1xf32>
    %13 = arith.divf %11, %12 : vector<16x1xf32>
    %14 = vector.broadcast %6 : vector<16x1xf32> to vector<16x32xf32>
    %15 = arith.subf %0, %14 : vector<16x32xf32>
    %cst_8 = arith.constant 9.99999974E-6 : f32
    %16 = vector.broadcast %cst_8 : f32 to vector<16x1xf32>
    %17 = arith.addf %13, %16 : vector<16x1xf32>
    %18 = math.rsqrt %17 : vector<16x1xf32>
    %19 = vector.broadcast %18 : vector<16x1xf32> to vector<16x32xf32>
    %20 = arith.mulf %15, %19 : vector<16x32xf32>
    %21 = vector.broadcast %1 : vector<1x32xf32> to vector<16x32xf32>
    %22 = arith.mulf %20, %21 : vector<16x32xf32>
    %23 = vector.broadcast %2 : vector<1x32xf32> to vector<16x32xf32>
    %24 = arith.addf %22, %23 : vector<16x32xf32>
    %25 = arith.truncf %24 : vector<16x32xf32> to vector<16x32xbf16>
    %c0_9 = arith.constant 0 : index
    %c0_10 = arith.constant 0 : index
    %26 = vector.load %arg5[%c0_9, %c0_10] : memref<32x32xbf16, #tpu.memory_space<vmem>>, vector<32x32xbf16>
    %27 = vector.extract_strided_slice %25 {offsets = [0, 0], sizes = [8, 32], strides = [1, 1]} : vector<16x32xbf16> to vector<8x32xbf16>
    %28 = vector.extract_strided_slice %27 {offsets = [7, 0], sizes = [1, 32], strides = [1, 1]} : vector<8x32xbf16> to vector<1x32xbf16>
    %cst_11 = arith.constant dense<0.000000e+00> : vector<1x32xf32>
    %29 = tpu.matmul %28, %26, %cst_11 {dimension_numbers = #tpu.dot_dimension_numbers<[1], [0], [0], [1], [0, 0, 1, 1], [], []>} : vector<1x32xbf16>, vector<32x32xbf16>, vector<1x32xf32> -> vector<1x32xf32>
    %30 = arith.truncf %29 : vector<1x32xf32> to vector<1x32xbf16>
    %cst_12 = arith.constant dense<0.000000e+00> : vector<1x8xf32>
    %31 = tpu.matmul %30, %27, %cst_12 {dimension_numbers = #tpu.dot_dimension_numbers<[1], [1], [0], [0], [0, 0, 1, 0], [], []>} : vector<1x32xbf16>, vector<8x32xbf16>, vector<1x8xf32> -> vector<1x8xf32>
    %cst_13 = arith.constant 0.0883883461 : f32
    %32 = vector.broadcast %cst_13 : f32 to vector<1x8xf32>
    %33 = arith.mulf %31, %32 : vector<1x8xf32>
    %34 = arith.negf %33 : vector<1x8xf32>
    %35 = math.exp %34 : vector<1x8xf32>
    %cst_14 = arith.constant 1.000000e+00 : f32
    %36 = vector.broadcast %cst_14 : f32 to vector<1x8xf32>
    %37 = arith.addf %36, %35 : vector<1x8xf32>
    %38 = arith.divf %36, %37 : vector<1x8xf32>
    %c0_15 = arith.constant 0 : index
    %c0_16 = arith.constant 0 : index
    %39 = vector.load %arg17[%c0_15, %c0_16] : memref<2x8xf32, #tpu.memory_space<vmem>>, vector<1x8xf32>
    tpu.vector_store %arg17[%c0_15, %c0_16], %38 {strides = array<i32>} : memref<2x8xf32, #tpu.memory_space<vmem>>, vector<1x8xf32>,
    %40 = vector.extract_strided_slice %25 {offsets = [8, 0], sizes = [8, 32], strides = [1, 1]} : vector<16x32xbf16> to vector<8x32xbf16>
    %41 = vector.extract_strided_slice %40 {offsets = [7, 0], sizes = [1, 32], strides = [1, 1]} : vector<8x32xbf16> to vector<1x32xbf16>
    %cst_17 = arith.constant dense<0.000000e+00> : vector<1x32xf32>
    %42 = tpu.matmul %41, %26, %cst_17 {dimension_numbers = #tpu.dot_dimension_numbers<[1], [0], [0], [1], [0, 0, 1, 1], [], []>} : vector<1x32xbf16>, vector<32x32xbf16>, vector<1x32xf32> -> vector<1x32xf32>
    %43 = arith.truncf %42 : vector<1x32xf32> to vector<1x32xbf16>
    %cst_18 = arith.constant dense<0.000000e+00> : vector<1x8xf32>
    %44 = tpu.matmul %43, %40, %cst_18 {dimension_numbers = #tpu.dot_dimension_numbers<[1], [1], [0], [0], [0, 0, 1, 0], [], []>} : vector<1x32xbf16>, vector<8x32xbf16>, vector<1x8xf32> -> vector<1x8xf32>
    %cst_19 = arith.constant 0.0883883461 : f32
    %45 = vector.broadcast %cst_19 : f32 to vector<1x8xf32>
    %46 = arith.mulf %44, %45 : vector<1x8xf32>
    %47 = arith.negf %46 : vector<1x8xf32>
    %48 = math.exp %47 : vector<1x8xf32>
    %cst_20 = arith.constant 1.000000e+00 : f32
    %49 = vector.broadcast %cst_20 : f32 to vector<1x8xf32>
    %50 = arith.addf %49, %48 : vector<1x8xf32>
    %51 = arith.divf %49, %50 : vector<1x8xf32>
    %c1 = arith.constant 1 : index
    %c0_21 = arith.constant 0 : index
    %52 = vector.load %arg17[%c1, %c0_21] : memref<2x8xf32, #tpu.memory_space<vmem>>, vector<1x8xf32>
    tpu.vector_store %arg17[%c1, %c0_21], %51 {strides = array<i32>} : memref<2x8xf32, #tpu.memory_space<vmem>>, vector<1x8xf32>,
    %c0_22 = arith.constant 0 : index
    %c0_23 = arith.constant 0 : index
    %c0_24 = arith.constant 0 : index
    %53 = vector.load %arg2[%c0_22, %c0_23, %c0_24] : memref<4x8x32xbf16, #tpu.memory_space<vmem>>, vector<1x8x32xbf16>
    %54 = vector.shape_cast %53 : vector<1x8x32xbf16> to vector<8x32xbf16>
    %cst_25 = arith.constant dense<0.000000e+00> : vector<16x8xf32>
    %55 = tpu.matmul %25, %54, %cst_25 {dimension_numbers = #tpu.dot_dimension_numbers<[1], [1], [0], [0], [0, 0, 1, 0], [], []>} : vector<16x32xbf16>, vector<8x32xbf16>, vector<16x8xf32> -> vector<16x8xf32>
    %56 = arith.truncf %55 : vector<16x8xf32> to vector<16x8xbf16>
    %c0_26 = arith.constant 0 : index
    %c0_27 = arith.constant 0 : index
    %c0_28 = arith.constant 0 : index
    %57 = vector.load %arg3[%c0_26, %c0_27, %c0_28] : memref<4x8x32xbf16, #tpu.memory_space<vmem>>, vector<1x8x32xbf16>
    %58 = vector.shape_cast %57 : vector<1x8x32xbf16> to vector<8x32xbf16>
    %cst_29 = arith.constant dense<0.000000e+00> : vector<16x8xf32>
    %59 = tpu.matmul %25, %58, %cst_29 {dimension_numbers = #tpu.dot_dimension_numbers<[1], [1], [0], [0], [0, 0, 1, 0], [], []>} : vector<16x32xbf16>, vector<8x32xbf16>, vector<16x8xf32> -> vector<16x8xf32>
    %60 = arith.truncf %59 : vector<16x8xf32> to vector<16x8xbf16>
    %c0_30 = arith.constant 0 : index
    %c0_31 = arith.constant 0 : index
    %c0_32 = arith.constant 0 : index
    %61 = vector.load %arg4[%c0_30, %c0_31, %c0_32] : memref<4x8x32xbf16, #tpu.memory_space<vmem>>, vector<1x8x32xbf16>
    %62 = vector.shape_cast %61 : vector<1x8x32xbf16> to vector<8x32xbf16>
    %cst_33 = arith.constant dense<0.000000e+00> : vector<16x8xf32>
    %63 = tpu.matmul %25, %62, %cst_33 {dimension_numbers = #tpu.dot_dimension_numbers<[1], [1], [0], [0], [0, 0, 1, 0], [], []>} : vector<16x32xbf16>, vector<8x32xbf16>, vector<16x8xf32> -> vector<16x8xf32>
    %64 = arith.truncf %63 : vector<16x8xf32> to vector<16x8xbf16>
    %65 = vector.extract_strided_slice %56 {offsets = [0, 0], sizes = [8, 8], strides = [1, 1]} : vector<16x8xbf16> to vector<8x8xbf16>
    %66 = vector.extract_strided_slice %60 {offsets = [0, 0], sizes = [8, 8], strides = [1, 1]} : vector<16x8xbf16> to vector<8x8xbf16>
    %67 = vector.extract_strided_slice %64 {offsets = [0, 0], sizes = [8, 8], strides = [1, 1]} : vector<16x8xbf16> to vector<8x8xbf16>
    %cst_34 = arith.constant dense<0.000000e+00> : vector<8x8xf32>
    %68 = tpu.matmul %65, %66, %cst_34 {dimension_numbers = #tpu.dot_dimension_numbers<[1], [1], [0], [0], [0, 0, 1, 0], [], []>} : vector<8x8xbf16>, vector<8x8xbf16>, vector<8x8xf32> -> vector<8x8xf32>
    %cst_35 = arith.constant 0.353553385 : f32
    %69 = vector.broadcast %cst_35 : f32 to vector<8x8xf32>
    %70 = arith.mulf %68, %69 : vector<8x8xf32>
    %cst_36 = arith.constant dense<0xFF800000> : vector<8xf32>
    %71 = vector.multi_reduction <maximumf>, %70, %cst_36 [1] : vector<8x8xf32> to vector<8xf32>
    %72 = vector.shape_cast %71 : vector<8xf32> to vector<8x1xf32>
    %73 = vector.broadcast %72 : vector<8x1xf32> to vector<8x8xf32>
    %74 = arith.subf %70, %73 : vector<8x8xf32>
    %75 = math.exp %74 : vector<8x8xf32>
    %cst_37 = arith.constant dense<0.000000e+00> : vector<8xf32>
    %76 = vector.multi_reduction <add>, %75, %cst_37 [1] : vector<8x8xf32> to vector<8xf32>
    %77 = vector.shape_cast %76 : vector<8xf32> to vector<8x1xf32>
    %78 = vector.broadcast %38 : vector<1x8xf32> to vector<8x8xf32>
    %79 = arith.mulf %75, %78 : vector<8x8xf32>
    %80 = arith.truncf %79 : vector<8x8xf32> to vector<8x8xbf16>
    %cst_38 = arith.constant dense<0.000000e+00> : vector<8x8xf32>
    %81 = tpu.matmul %80, %67, %cst_38 {dimension_numbers = #tpu.dot_dimension_numbers<[1], [0], [0], [1], [0, 0, 1, 1], [], []>} : vector<8x8xbf16>, vector<8x8xbf16>, vector<8x8xf32> -> vector<8x8xf32>
    %82 = tpu.reciprocal %77 {approx = true} : vector<8x1xf32> -> vector<8x1xf32>
    %83 = vector.broadcast %82 : vector<8x1xf32> to vector<8x8xf32>
    %84 = arith.mulf %81, %83 : vector<8x8xf32>
    %c0_39 = arith.constant 0 : index
    %c0_40 = arith.constant 0 : index
    %85 = vector.load %arg18[%c0_39, %c0_40] : memref<16x32xf32, #tpu.memory_space<vmem>>, vector<8x8xf32>
    tpu.vector_store %arg18[%c0_39, %c0_40], %84 {strides = array<i32>} : memref<16x32xf32, #tpu.memory_space<vmem>>, vector<8x8xf32>,
    %86 = vector.extract_strided_slice %56 {offsets = [8, 0], sizes = [8, 8], strides = [1, 1]} : vector<16x8xbf16> to vector<8x8xbf16>
    %87 = vector.extract_strided_slice %60 {offsets = [8, 0], sizes = [8, 8], strides = [1, 1]} : vector<16x8xbf16> to vector<8x8xbf16>
    %88 = vector.extract_strided_slice %64 {offsets = [8, 0], sizes = [8, 8], strides = [1, 1]} : vector<16x8xbf16> to vector<8x8xbf16>
    %cst_41 = arith.constant dense<0.000000e+00> : vector<8x8xf32>
    %89 = tpu.matmul %86, %87, %cst_41 {dimension_numbers = #tpu.dot_dimension_numbers<[1], [1], [0], [0], [0, 0, 1, 0], [], []>} : vector<8x8xbf16>, vector<8x8xbf16>, vector<8x8xf32> -> vector<8x8xf32>
    %cst_42 = arith.constant 0.353553385 : f32
    %90 = vector.broadcast %cst_42 : f32 to vector<8x8xf32>
    %91 = arith.mulf %89, %90 : vector<8x8xf32>
    %cst_43 = arith.constant dense<0xFF800000> : vector<8xf32>
    %92 = vector.multi_reduction <maximumf>, %91, %cst_43 [1] : vector<8x8xf32> to vector<8xf32>
    %93 = vector.shape_cast %92 : vector<8xf32> to vector<8x1xf32>
    %94 = vector.broadcast %93 : vector<8x1xf32> to vector<8x8xf32>
    %95 = arith.subf %91, %94 : vector<8x8xf32>
    %96 = math.exp %95 : vector<8x8xf32>
    %cst_44 = arith.constant dense<0.000000e+00> : vector<8xf32>
    %97 = vector.multi_reduction <add>, %96, %cst_44 [1] : vector<8x8xf32> to vector<8xf32>
    %98 = vector.shape_cast %97 : vector<8xf32> to vector<8x1xf32>
    %99 = vector.broadcast %51 : vector<1x8xf32> to vector<8x8xf32>
    %100 = arith.mulf %96, %99 : vector<8x8xf32>
    %101 = arith.truncf %100 : vector<8x8xf32> to vector<8x8xbf16>
    %cst_45 = arith.constant dense<0.000000e+00> : vector<8x8xf32>
    %102 = tpu.matmul %101, %88, %cst_45 {dimension_numbers = #tpu.dot_dimension_numbers<[1], [0], [0], [1], [0, 0, 1, 1], [], []>} : vector<8x8xbf16>, vector<8x8xbf16>, vector<8x8xf32> -> vector<8x8xf32>
    %103 = tpu.reciprocal %98 {approx = true} : vector<8x1xf32> -> vector<8x1xf32>
    %104 = vector.broadcast %103 : vector<8x1xf32> to vector<8x8xf32>
    %105 = arith.mulf %102, %104 : vector<8x8xf32>
    %c8 = arith.constant 8 : index
    %c0_46 = arith.constant 0 : index
    %106 = vector.load %arg18[%c8, %c0_46] : memref<16x32xf32, #tpu.memory_space<vmem>>, vector<8x8xf32>
    tpu.vector_store %arg18[%c8, %c0_46], %105 {strides = array<i32>} : memref<16x32xf32, #tpu.memory_space<vmem>>, vector<8x8xf32>,
    %c1_47 = arith.constant 1 : index
    %c0_48 = arith.constant 0 : index
    %c0_49 = arith.constant 0 : index
    %107 = vector.load %arg2[%c1_47, %c0_48, %c0_49] : memref<4x8x32xbf16, #tpu.memory_space<vmem>>, vector<1x8x32xbf16>
    %108 = vector.shape_cast %107 : vector<1x8x32xbf16> to vector<8x32xbf16>
    %cst_50 = arith.constant dense<0.000000e+00> : vector<16x8xf32>
    %109 = tpu.matmul %25, %108, %cst_50 {dimension_numbers = #tpu.dot_dimension_numbers<[1], [1], [0], [0], [0, 0, 1, 0], [], []>} : vector<16x32xbf16>, vector<8x32xbf16>, vector<16x8xf32> -> vector<16x8xf32>
    %110 = arith.truncf %109 : vector<16x8xf32> to vector<16x8xbf16>
    %c1_51 = arith.constant 1 : index
    %c0_52 = arith.constant 0 : index
    %c0_53 = arith.constant 0 : index
    %111 = vector.load %arg3[%c1_51, %c0_52, %c0_53] : memref<4x8x32xbf16, #tpu.memory_space<vmem>>, vector<1x8x32xbf16>
    %112 = vector.shape_cast %111 : vector<1x8x32xbf16> to vector<8x32xbf16>
    %cst_54 = arith.constant dense<0.000000e+00> : vector<16x8xf32>
    %113 = tpu.matmul %25, %112, %cst_54 {dimension_numbers = #tpu.dot_dimension_numbers<[1], [1], [0], [0], [0, 0, 1, 0], [], []>} : vector<16x32xbf16>, vector<8x32xbf16>, vector<16x8xf32> -> vector<16x8xf32>
    %114 = arith.truncf %113 : vector<16x8xf32> to vector<16x8xbf16>
    %c1_55 = arith.constant 1 : index
    %c0_56 = arith.constant 0 : index
    %c0_57 = arith.constant 0 : index
    %115 = vector.load %arg4[%c1_55, %c0_56, %c0_57] : memref<4x8x32xbf16, #tpu.memory_space<vmem>>, vector<1x8x32xbf16>
    %116 = vector.shape_cast %115 : vector<1x8x32xbf16> to vector<8x32xbf16>
    %cst_58 = arith.constant dense<0.000000e+00> : vector<16x8xf32>
    %117 = tpu.matmul %25, %116, %cst_58 {dimension_numbers = #tpu.dot_dimension_numbers<[1], [1], [0], [0], [0, 0, 1, 0], [], []>} : vector<16x32xbf16>, vector<8x32xbf16>, vector<16x8xf32> -> vector<16x8xf32>
    %118 = arith.truncf %117 : vector<16x8xf32> to vector<16x8xbf16>
    %119 = vector.extract_strided_slice %110 {offsets = [0, 0], sizes = [8, 8], strides = [1, 1]} : vector<16x8xbf16> to vector<8x8xbf16>
    %120 = vector.extract_strided_slice %114 {offsets = [0, 0], sizes = [8, 8], strides = [1, 1]} : vector<16x8xbf16> to vector<8x8xbf16>
    %121 = vector.extract_strided_slice %118 {offsets = [0, 0], sizes = [8, 8], strides = [1, 1]} : vector<16x8xbf16> to vector<8x8xbf16>
    %cst_59 = arith.constant dense<0.000000e+00> : vector<8x8xf32>
    %122 = tpu.matmul %119, %120, %cst_59 {dimension_numbers = #tpu.dot_dimension_numbers<[1], [1], [0], [0], [0, 0, 1, 0], [], []>} : vector<8x8xbf16>, vector<8x8xbf16>, vector<8x8xf32> -> vector<8x8xf32>
    %cst_60 = arith.constant 0.353553385 : f32
    %123 = vector.broadcast %cst_60 : f32 to vector<8x8xf32>
    %124 = arith.mulf %122, %123 : vector<8x8xf32>
    %cst_61 = arith.constant dense<0xFF800000> : vector<8xf32>
    %125 = vector.multi_reduction <maximumf>, %124, %cst_61 [1] : vector<8x8xf32> to vector<8xf32>
    %126 = vector.shape_cast %125 : vector<8xf32> to vector<8x1xf32>
    %127 = vector.broadcast %126 : vector<8x1xf32> to vector<8x8xf32>
    %128 = arith.subf %124, %127 : vector<8x8xf32>
    %129 = math.exp %128 : vector<8x8xf32>
    %cst_62 = arith.constant dense<0.000000e+00> : vector<8xf32>
    %130 = vector.multi_reduction <add>, %129, %cst_62 [1] : vector<8x8xf32> to vector<8xf32>
    %131 = vector.shape_cast %130 : vector<8xf32> to vector<8x1xf32>
    %132 = vector.broadcast %38 : vector<1x8xf32> to vector<8x8xf32>
    %133 = arith.mulf %129, %132 : vector<8x8xf32>
    %134 = arith.truncf %133 : vector<8x8xf32> to vector<8x8xbf16>
    %cst_63 = arith.constant dense<0.000000e+00> : vector<8x8xf32>
    %135 = tpu.matmul %134, %121, %cst_63 {dimension_numbers = #tpu.dot_dimension_numbers<[1], [0], [0], [1], [0, 0, 1, 1], [], []>} : vector<8x8xbf16>, vector<8x8xbf16>, vector<8x8xf32> -> vector<8x8xf32>
    %136 = tpu.reciprocal %131 {approx = true} : vector<8x1xf32> -> vector<8x1xf32>
    %137 = vector.broadcast %136 : vector<8x1xf32> to vector<8x8xf32>
    %138 = arith.mulf %135, %137 : vector<8x8xf32>
    %c0_64 = arith.constant 0 : index
    %c8_65 = arith.constant 8 : index
    %139 = vector.load %arg18[%c0_64, %c8_65] : memref<16x32xf32, #tpu.memory_space<vmem>>, vector<8x8xf32>
    tpu.vector_store %arg18[%c0_64, %c8_65], %138 {strides = array<i32>} : memref<16x32xf32, #tpu.memory_space<vmem>>, vector<8x8xf32>,
    %140 = vector.extract_strided_slice %110 {offsets = [8, 0], sizes = [8, 8], strides = [1, 1]} : vector<16x8xbf16> to vector<8x8xbf16>
    %141 = vector.extract_strided_slice %114 {offsets = [8, 0], sizes = [8, 8], strides = [1, 1]} : vector<16x8xbf16> to vector<8x8xbf16>
    %142 = vector.extract_strided_slice %118 {offsets = [8, 0], sizes = [8, 8], strides = [1, 1]} : vector<16x8xbf16> to vector<8x8xbf16>
    %cst_66 = arith.constant dense<0.000000e+00> : vector<8x8xf32>
    %143 = tpu.matmul %140, %141, %cst_66 {dimension_numbers = #tpu.dot_dimension_numbers<[1], [1], [0], [0], [0, 0, 1, 0], [], []>} : vector<8x8xbf16>, vector<8x8xbf16>, vector<8x8xf32> -> vector<8x8xf32>
    %cst_67 = arith.constant 0.353553385 : f32
    %144 = vector.broadcast %cst_67 : f32 to vector<8x8xf32>
    %145 = arith.mulf %143, %144 : vector<8x8xf32>
    %cst_68 = arith.constant dense<0xFF800000> : vector<8xf32>
    %146 = vector.multi_reduction <maximumf>, %145, %cst_68 [1] : vector<8x8xf32> to vector<8xf32>
    %147 = vector.shape_cast %146 : vector<8xf32> to vector<8x1xf32>
    %148 = vector.broadcast %147 : vector<8x1xf32> to vector<8x8xf32>
    %149 = arith.subf %145, %148 : vector<8x8xf32>
    %150 = math.exp %149 : vector<8x8xf32>
    %cst_69 = arith.constant dense<0.000000e+00> : vector<8xf32>
    %151 = vector.multi_reduction <add>, %150, %cst_69 [1] : vector<8x8xf32> to vector<8xf32>
    %152 = vector.shape_cast %151 : vector<8xf32> to vector<8x1xf32>
    %153 = vector.broadcast %51 : vector<1x8xf32> to vector<8x8xf32>
    %154 = arith.mulf %150, %153 : vector<8x8xf32>
    %155 = arith.truncf %154 : vector<8x8xf32> to vector<8x8xbf16>
    %cst_70 = arith.constant dense<0.000000e+00> : vector<8x8xf32>
    %156 = tpu.matmul %155, %142, %cst_70 {dimension_numbers = #tpu.dot_dimension_numbers<[1], [0], [0], [1], [0, 0, 1, 1], [], []>} : vector<8x8xbf16>, vector<8x8xbf16>, vector<8x8xf32> -> vector<8x8xf32>
    %157 = tpu.reciprocal %152 {approx = true} : vector<8x1xf32> -> vector<8x1xf32>
    %158 = vector.broadcast %157 : vector<8x1xf32> to vector<8x8xf32>
    %159 = arith.mulf %156, %158 : vector<8x8xf32>
    %c8_71 = arith.constant 8 : index
    %c8_72 = arith.constant 8 : index
    %160 = vector.load %arg18[%c8_71, %c8_72] : memref<16x32xf32, #tpu.memory_space<vmem>>, vector<8x8xf32>
    tpu.vector_store %arg18[%c8_71, %c8_72], %159 {strides = array<i32>} : memref<16x32xf32, #tpu.memory_space<vmem>>, vector<8x8xf32>,
    %c2 = arith.constant 2 : index
    %c0_73 = arith.constant 0 : index
    %c0_74 = arith.constant 0 : index
    %161 = vector.load %arg2[%c2, %c0_73, %c0_74] : memref<4x8x32xbf16, #tpu.memory_space<vmem>>, vector<1x8x32xbf16>
    %162 = vector.shape_cast %161 : vector<1x8x32xbf16> to vector<8x32xbf16>
    %cst_75 = arith.constant dense<0.000000e+00> : vector<16x8xf32>
    %163 = tpu.matmul %25, %162, %cst_75 {dimension_numbers = #tpu.dot_dimension_numbers<[1], [1], [0], [0], [0, 0, 1, 0], [], []>} : vector<16x32xbf16>, vector<8x32xbf16>, vector<16x8xf32> -> vector<16x8xf32>
    %164 = arith.truncf %163 : vector<16x8xf32> to vector<16x8xbf16>
    %c2_76 = arith.constant 2 : index
    %c0_77 = arith.constant 0 : index
    %c0_78 = arith.constant 0 : index
    %165 = vector.load %arg3[%c2_76, %c0_77, %c0_78] : memref<4x8x32xbf16, #tpu.memory_space<vmem>>, vector<1x8x32xbf16>
    %166 = vector.shape_cast %165 : vector<1x8x32xbf16> to vector<8x32xbf16>
    %cst_79 = arith.constant dense<0.000000e+00> : vector<16x8xf32>
    %167 = tpu.matmul %25, %166, %cst_79 {dimension_numbers = #tpu.dot_dimension_numbers<[1], [1], [0], [0], [0, 0, 1, 0], [], []>} : vector<16x32xbf16>, vector<8x32xbf16>, vector<16x8xf32> -> vector<16x8xf32>
    %168 = arith.truncf %167 : vector<16x8xf32> to vector<16x8xbf16>
    %c2_80 = arith.constant 2 : index
    %c0_81 = arith.constant 0 : index
    %c0_82 = arith.constant 0 : index
    %169 = vector.load %arg4[%c2_80, %c0_81, %c0_82] : memref<4x8x32xbf16, #tpu.memory_space<vmem>>, vector<1x8x32xbf16>
    %170 = vector.shape_cast %169 : vector<1x8x32xbf16> to vector<8x32xbf16>
    %cst_83 = arith.constant dense<0.000000e+00> : vector<16x8xf32>
    %171 = tpu.matmul %25, %170, %cst_83 {dimension_numbers = #tpu.dot_dimension_numbers<[1], [1], [0], [0], [0, 0, 1, 0], [], []>} : vector<16x32xbf16>, vector<8x32xbf16>, vector<16x8xf32> -> vector<16x8xf32>
    %172 = arith.truncf %171 : vector<16x8xf32> to vector<16x8xbf16>
    %173 = vector.extract_strided_slice %164 {offsets = [0, 0], sizes = [8, 8], strides = [1, 1]} : vector<16x8xbf16> to vector<8x8xbf16>
    %174 = vector.extract_strided_slice %168 {offsets = [0, 0], sizes = [8, 8], strides = [1, 1]} : vector<16x8xbf16> to vector<8x8xbf16>
    %175 = vector.extract_strided_slice %172 {offsets = [0, 0], sizes = [8, 8], strides = [1, 1]} : vector<16x8xbf16> to vector<8x8xbf16>
    %cst_84 = arith.constant dense<0.000000e+00> : vector<8x8xf32>
    %176 = tpu.matmul %173, %174, %cst_84 {dimension_numbers = #tpu.dot_dimension_numbers<[1], [1], [0], [0], [0, 0, 1, 0], [], []>} : vector<8x8xbf16>, vector<8x8xbf16>, vector<8x8xf32> -> vector<8x8xf32>
    %cst_85 = arith.constant 0.353553385 : f32
    %177 = vector.broadcast %cst_85 : f32 to vector<8x8xf32>
    %178 = arith.mulf %176, %177 : vector<8x8xf32>
    %cst_86 = arith.constant dense<0xFF800000> : vector<8xf32>
    %179 = vector.multi_reduction <maximumf>, %178, %cst_86 [1] : vector<8x8xf32> to vector<8xf32>
    %180 = vector.shape_cast %179 : vector<8xf32> to vector<8x1xf32>
    %181 = vector.broadcast %180 : vector<8x1xf32> to vector<8x8xf32>
    %182 = arith.subf %178, %181 : vector<8x8xf32>
    %183 = math.exp %182 : vector<8x8xf32>
    %cst_87 = arith.constant dense<0.000000e+00> : vector<8xf32>
    %184 = vector.multi_reduction <add>, %183, %cst_87 [1] : vector<8x8xf32> to vector<8xf32>
    %185 = vector.shape_cast %184 : vector<8xf32> to vector<8x1xf32>
    %186 = vector.broadcast %38 : vector<1x8xf32> to vector<8x8xf32>
    %187 = arith.mulf %183, %186 : vector<8x8xf32>
    %188 = arith.truncf %187 : vector<8x8xf32> to vector<8x8xbf16>
    %cst_88 = arith.constant dense<0.000000e+00> : vector<8x8xf32>
    %189 = tpu.matmul %188, %175, %cst_88 {dimension_numbers = #tpu.dot_dimension_numbers<[1], [0], [0], [1], [0, 0, 1, 1], [], []>} : vector<8x8xbf16>, vector<8x8xbf16>, vector<8x8xf32> -> vector<8x8xf32>
    %190 = tpu.reciprocal %185 {approx = true} : vector<8x1xf32> -> vector<8x1xf32>
    %191 = vector.broadcast %190 : vector<8x1xf32> to vector<8x8xf32>
    %192 = arith.mulf %189, %191 : vector<8x8xf32>
    %c0_89 = arith.constant 0 : index
    %c16 = arith.constant 16 : index
    %193 = vector.load %arg18[%c0_89, %c16] : memref<16x32xf32, #tpu.memory_space<vmem>>, vector<8x8xf32>
    tpu.vector_store %arg18[%c0_89, %c16], %192 {strides = array<i32>} : memref<16x32xf32, #tpu.memory_space<vmem>>, vector<8x8xf32>,
    %194 = vector.extract_strided_slice %164 {offsets = [8, 0], sizes = [8, 8], strides = [1, 1]} : vector<16x8xbf16> to vector<8x8xbf16>
    %195 = vector.extract_strided_slice %168 {offsets = [8, 0], sizes = [8, 8], strides = [1, 1]} : vector<16x8xbf16> to vector<8x8xbf16>
    %196 = vector.extract_strided_slice %172 {offsets = [8, 0], sizes = [8, 8], strides = [1, 1]} : vector<16x8xbf16> to vector<8x8xbf16>
    %cst_90 = arith.constant dense<0.000000e+00> : vector<8x8xf32>
    %197 = tpu.matmul %194, %195, %cst_90 {dimension_numbers = #tpu.dot_dimension_numbers<[1], [1], [0], [0], [0, 0, 1, 0], [], []>} : vector<8x8xbf16>, vector<8x8xbf16>, vector<8x8xf32> -> vector<8x8xf32>
    %cst_91 = arith.constant 0.353553385 : f32
    %198 = vector.broadcast %cst_91 : f32 to vector<8x8xf32>
    %199 = arith.mulf %197, %198 : vector<8x8xf32>
    %cst_92 = arith.constant dense<0xFF800000> : vector<8xf32>
    %200 = vector.multi_reduction <maximumf>, %199, %cst_92 [1] : vector<8x8xf32> to vector<8xf32>
    %201 = vector.shape_cast %200 : vector<8xf32> to vector<8x1xf32>
    %202 = vector.broadcast %201 : vector<8x1xf32> to vector<8x8xf32>
    %203 = arith.subf %199, %202 : vector<8x8xf32>
    %204 = math.exp %203 : vector<8x8xf32>
    %cst_93 = arith.constant dense<0.000000e+00> : vector<8xf32>
    %205 = vector.multi_reduction <add>, %204, %cst_93 [1] : vector<8x8xf32> to vector<8xf32>
    %206 = vector.shape_cast %205 : vector<8xf32> to vector<8x1xf32>
    %207 = vector.broadcast %51 : vector<1x8xf32> to vector<8x8xf32>
    %208 = arith.mulf %204, %207 : vector<8x8xf32>
    %209 = arith.truncf %208 : vector<8x8xf32> to vector<8x8xbf16>
    %cst_94 = arith.constant dense<0.000000e+00> : vector<8x8xf32>
    %210 = tpu.matmul %209, %196, %cst_94 {dimension_numbers = #tpu.dot_dimension_numbers<[1], [0], [0], [1], [0, 0, 1, 1], [], []>} : vector<8x8xbf16>, vector<8x8xbf16>, vector<8x8xf32> -> vector<8x8xf32>
    %211 = tpu.reciprocal %206 {approx = true} : vector<8x1xf32> -> vector<8x1xf32>
    %212 = vector.broadcast %211 : vector<8x1xf32> to vector<8x8xf32>
    %213 = arith.mulf %210, %212 : vector<8x8xf32>
    %c8_95 = arith.constant 8 : index
    %c16_96 = arith.constant 16 : index
    %214 = vector.load %arg18[%c8_95, %c16_96] : memref<16x32xf32, #tpu.memory_space<vmem>>, vector<8x8xf32>
    tpu.vector_store %arg18[%c8_95, %c16_96], %213 {strides = array<i32>} : memref<16x32xf32, #tpu.memory_space<vmem>>, vector<8x8xf32>,
    %c3 = arith.constant 3 : index
    %c0_97 = arith.constant 0 : index
    %c0_98 = arith.constant 0 : index
    %215 = vector.load %arg2[%c3, %c0_97, %c0_98] : memref<4x8x32xbf16, #tpu.memory_space<vmem>>, vector<1x8x32xbf16>
    %216 = vector.shape_cast %215 : vector<1x8x32xbf16> to vector<8x32xbf16>
    %cst_99 = arith.constant dense<0.000000e+00> : vector<16x8xf32>
    %217 = tpu.matmul %25, %216, %cst_99 {dimension_numbers = #tpu.dot_dimension_numbers<[1], [1], [0], [0], [0, 0, 1, 0], [], []>} : vector<16x32xbf16>, vector<8x32xbf16>, vector<16x8xf32> -> vector<16x8xf32>
    %218 = arith.truncf %217 : vector<16x8xf32> to vector<16x8xbf16>
    %c3_100 = arith.constant 3 : index
    %c0_101 = arith.constant 0 : index
    %c0_102 = arith.constant 0 : index
    %219 = vector.load %arg3[%c3_100, %c0_101, %c0_102] : memref<4x8x32xbf16, #tpu.memory_space<vmem>>, vector<1x8x32xbf16>
    %220 = vector.shape_cast %219 : vector<1x8x32xbf16> to vector<8x32xbf16>
    %cst_103 = arith.constant dense<0.000000e+00> : vector<16x8xf32>
    %221 = tpu.matmul %25, %220, %cst_103 {dimension_numbers = #tpu.dot_dimension_numbers<[1], [1], [0], [0], [0, 0, 1, 0], [], []>} : vector<16x32xbf16>, vector<8x32xbf16>, vector<16x8xf32> -> vector<16x8xf32>
    %222 = arith.truncf %221 : vector<16x8xf32> to vector<16x8xbf16>
    %c3_104 = arith.constant 3 : index
    %c0_105 = arith.constant 0 : index
    %c0_106 = arith.constant 0 : index
    %223 = vector.load %arg4[%c3_104, %c0_105, %c0_106] : memref<4x8x32xbf16, #tpu.memory_space<vmem>>, vector<1x8x32xbf16>
    %224 = vector.shape_cast %223 : vector<1x8x32xbf16> to vector<8x32xbf16>
    %cst_107 = arith.constant dense<0.000000e+00> : vector<16x8xf32>
    %225 = tpu.matmul %25, %224, %cst_107 {dimension_numbers = #tpu.dot_dimension_numbers<[1], [1], [0], [0], [0, 0, 1, 0], [], []>} : vector<16x32xbf16>, vector<8x32xbf16>, vector<16x8xf32> -> vector<16x8xf32>
    %226 = arith.truncf %225 : vector<16x8xf32> to vector<16x8xbf16>
    %227 = vector.extract_strided_slice %218 {offsets = [0, 0], sizes = [8, 8], strides = [1, 1]} : vector<16x8xbf16> to vector<8x8xbf16>
    %228 = vector.extract_strided_slice %222 {offsets = [0, 0], sizes = [8, 8], strides = [1, 1]} : vector<16x8xbf16> to vector<8x8xbf16>
    %229 = vector.extract_strided_slice %226 {offsets = [0, 0], sizes = [8, 8], strides = [1, 1]} : vector<16x8xbf16> to vector<8x8xbf16>
    %cst_108 = arith.constant dense<0.000000e+00> : vector<8x8xf32>
    %230 = tpu.matmul %227, %228, %cst_108 {dimension_numbers = #tpu.dot_dimension_numbers<[1], [1], [0], [0], [0, 0, 1, 0], [], []>} : vector<8x8xbf16>, vector<8x8xbf16>, vector<8x8xf32> -> vector<8x8xf32>
    %cst_109 = arith.constant 0.353553385 : f32
    %231 = vector.broadcast %cst_109 : f32 to vector<8x8xf32>
    %232 = arith.mulf %230, %231 : vector<8x8xf32>
    %cst_110 = arith.constant dense<0xFF800000> : vector<8xf32>
    %233 = vector.multi_reduction <maximumf>, %232, %cst_110 [1] : vector<8x8xf32> to vector<8xf32>
    %234 = vector.shape_cast %233 : vector<8xf32> to vector<8x1xf32>
    %235 = vector.broadcast %234 : vector<8x1xf32> to vector<8x8xf32>
    %236 = arith.subf %232, %235 : vector<8x8xf32>
    %237 = math.exp %236 : vector<8x8xf32>
    %cst_111 = arith.constant dense<0.000000e+00> : vector<8xf32>
    %238 = vector.multi_reduction <add>, %237, %cst_111 [1] : vector<8x8xf32> to vector<8xf32>
    %239 = vector.shape_cast %238 : vector<8xf32> to vector<8x1xf32>
    %240 = vector.broadcast %38 : vector<1x8xf32> to vector<8x8xf32>
    %241 = arith.mulf %237, %240 : vector<8x8xf32>
    %242 = arith.truncf %241 : vector<8x8xf32> to vector<8x8xbf16>
    %cst_112 = arith.constant dense<0.000000e+00> : vector<8x8xf32>
    %243 = tpu.matmul %242, %229, %cst_112 {dimension_numbers = #tpu.dot_dimension_numbers<[1], [0], [0], [1], [0, 0, 1, 1], [], []>} : vector<8x8xbf16>, vector<8x8xbf16>, vector<8x8xf32> -> vector<8x8xf32>
    %244 = tpu.reciprocal %239 {approx = true} : vector<8x1xf32> -> vector<8x1xf32>
    %245 = vector.broadcast %244 : vector<8x1xf32> to vector<8x8xf32>
    %246 = arith.mulf %243, %245 : vector<8x8xf32>
    %c0_113 = arith.constant 0 : index
    %c24 = arith.constant 24 : index
    %247 = vector.load %arg18[%c0_113, %c24] : memref<16x32xf32, #tpu.memory_space<vmem>>, vector<8x8xf32>
    tpu.vector_store %arg18[%c0_113, %c24], %246 {strides = array<i32>} : memref<16x32xf32, #tpu.memory_space<vmem>>, vector<8x8xf32>,
    %248 = vector.extract_strided_slice %218 {offsets = [8, 0], sizes = [8, 8], strides = [1, 1]} : vector<16x8xbf16> to vector<8x8xbf16>
    %249 = vector.extract_strided_slice %222 {offsets = [8, 0], sizes = [8, 8], strides = [1, 1]} : vector<16x8xbf16> to vector<8x8xbf16>
    %250 = vector.extract_strided_slice %226 {offsets = [8, 0], sizes = [8, 8], strides = [1, 1]} : vector<16x8xbf16> to vector<8x8xbf16>
    %cst_114 = arith.constant dense<0.000000e+00> : vector<8x8xf32>
    %251 = tpu.matmul %248, %249, %cst_114 {dimension_numbers = #tpu.dot_dimension_numbers<[1], [1], [0], [0], [0, 0, 1, 0], [], []>} : vector<8x8xbf16>, vector<8x8xbf16>, vector<8x8xf32> -> vector<8x8xf32>
    %cst_115 = arith.constant 0.353553385 : f32
    %252 = vector.broadcast %cst_115 : f32 to vector<8x8xf32>
    %253 = arith.mulf %251, %252 : vector<8x8xf32>
    %cst_116 = arith.constant dense<0xFF800000> : vector<8xf32>
    %254 = vector.multi_reduction <maximumf>, %253, %cst_116 [1] : vector<8x8xf32> to vector<8xf32>
    %255 = vector.shape_cast %254 : vector<8xf32> to vector<8x1xf32>
    %256 = vector.broadcast %255 : vector<8x1xf32> to vector<8x8xf32>
    %257 = arith.subf %253, %256 : vector<8x8xf32>
    %258 = math.exp %257 : vector<8x8xf32>
    %cst_117 = arith.constant dense<0.000000e+00> : vector<8xf32>
    %259 = vector.multi_reduction <add>, %258, %cst_117 [1] : vector<8x8xf32> to vector<8xf32>
    %260 = vector.shape_cast %259 : vector<8xf32> to vector<8x1xf32>
    %261 = vector.broadcast %51 : vector<1x8xf32> to vector<8x8xf32>
    %262 = arith.mulf %258, %261 : vector<8x8xf32>
    %263 = arith.truncf %262 : vector<8x8xf32> to vector<8x8xbf16>
    %cst_118 = arith.constant dense<0.000000e+00> : vector<8x8xf32>
    %264 = tpu.matmul %263, %250, %cst_118 {dimension_numbers = #tpu.dot_dimension_numbers<[1], [0], [0], [1], [0, 0, 1, 1], [], []>} : vector<8x8xbf16>, vector<8x8xbf16>, vector<8x8xf32> -> vector<8x8xf32>
    %265 = tpu.reciprocal %260 {approx = true} : vector<8x1xf32> -> vector<8x1xf32>
    %266 = vector.broadcast %265 : vector<8x1xf32> to vector<8x8xf32>
    %267 = arith.mulf %264, %266 : vector<8x8xf32>
    %c8_119 = arith.constant 8 : index
    %c24_120 = arith.constant 24 : index
    %268 = vector.load %arg18[%c8_119, %c24_120] : memref<16x32xf32, #tpu.memory_space<vmem>>, vector<8x8xf32>
    tpu.vector_store %arg18[%c8_119, %c24_120], %267 {strides = array<i32>} : memref<16x32xf32, #tpu.memory_space<vmem>>, vector<8x8xf32>,
    %c0_121 = arith.constant 0 : index
    %c0_122 = arith.constant 0 : index
    %269 = vector.load %arg18[%c0_121, %c0_122] : memref<16x32xf32, #tpu.memory_space<vmem>>, vector<16x32xf32>
    %270 = arith.truncf %269 : vector<16x32xf32> to vector<16x32xbf16>
    %c0_123 = arith.constant 0 : index
    %c0_124 = arith.constant 0 : index
    %271 = vector.load %arg6[%c0_123, %c0_124] : memref<32x32xbf16, #tpu.memory_space<vmem>>, vector<32x32xbf16>
    %cst_125 = arith.constant dense<0.000000e+00> : vector<16x32xf32>
    %272 = tpu.matmul %270, %271, %cst_125 {dimension_numbers = #tpu.dot_dimension_numbers<[1], [0], [0], [1], [0, 0, 1, 1], [], []>} : vector<16x32xbf16>, vector<32x32xbf16>, vector<16x32xf32> -> vector<16x32xf32>
    %273 = arith.addf %0, %272 : vector<16x32xf32>
    %c0_126 = arith.constant 0 : index
    %c0_127 = arith.constant 0 : index
    %274 = vector.load %arg7[%c0_126, %c0_127] : memref<1x32xf32, #tpu.memory_space<vmem>>, vector<1x32xf32>
    %275 = vector.broadcast %274 : vector<1x32xf32> to vector<16x32xf32>
    %276 = arith.addf %273, %275 : vector<16x32xf32>
    %c0_128 = arith.constant 0 : index
    %c0_129 = arith.constant 0 : index
    %277 = vector.load %arg10[%c0_128, %c0_129] : memref<1x32xf32, #tpu.memory_space<vmem>>, vector<1x32xf32>
    %c0_130 = arith.constant 0 : index
    %c0_131 = arith.constant 0 : index
    %278 = vector.load %arg11[%c0_130, %c0_131] : memref<1x32xf32, #tpu.memory_space<vmem>>, vector<1x32xf32>
    %cst_132 = arith.constant dense<0.000000e+00> : vector<16xf32>
    %279 = vector.multi_reduction <add>, %276, %cst_132 [1] : vector<16x32xf32> to vector<16xf32>
    %280 = vector.shape_cast %279 : vector<16xf32> to vector<16x1xf32>
    %cst_133 = arith.constant 3.200000e+01 : f32
    %281 = vector.broadcast %cst_133 : f32 to vector<16x1xf32>
    %282 = arith.divf %280, %281 : vector<16x1xf32>
    %283 = vector.broadcast %282 : vector<16x1xf32> to vector<16x32xf32>
    %284 = arith.subf %276, %283 : vector<16x32xf32>
    %285 = arith.mulf %284, %284 : vector<16x32xf32>
    %cst_134 = arith.constant dense<0.000000e+00> : vector<16xf32>
    %286 = vector.multi_reduction <add>, %285, %cst_134 [1] : vector<16x32xf32> to vector<16xf32>
    %287 = vector.shape_cast %286 : vector<16xf32> to vector<16x1xf32>
    %cst_135 = arith.constant 3.200000e+01 : f32
    %288 = vector.broadcast %cst_135 : f32 to vector<16x1xf32>
    %289 = arith.divf %287, %288 : vector<16x1xf32>
    %290 = vector.broadcast %282 : vector<16x1xf32> to vector<16x32xf32>
    %291 = arith.subf %276, %290 : vector<16x32xf32>
    %cst_136 = arith.constant 9.99999974E-6 : f32
    %292 = vector.broadcast %cst_136 : f32 to vector<16x1xf32>
    %293 = arith.addf %289, %292 : vector<16x1xf32>
    %294 = math.rsqrt %293 : vector<16x1xf32>
    %295 = vector.broadcast %294 : vector<16x1xf32> to vector<16x32xf32>
    %296 = arith.mulf %291, %295 : vector<16x32xf32>
    %297 = vector.broadcast %277 : vector<1x32xf32> to vector<16x32xf32>
    %298 = arith.mulf %296, %297 : vector<16x32xf32>
    %299 = vector.broadcast %278 : vector<1x32xf32> to vector<16x32xf32>
    %300 = arith.addf %298, %299 : vector<16x32xf32>
    %301 = arith.truncf %300 : vector<16x32xf32> to vector<16x32xbf16>
    %c0_137 = arith.constant 0 : index
    %c0_138 = arith.constant 0 : index
    %302 = vector.load %arg12[%c0_137, %c0_138] : memref<32x128xbf16, #tpu.memory_space<vmem>>, vector<32x128xbf16>
    %cst_139 = arith.constant dense<0.000000e+00> : vector<16x128xf32>
    %303 = tpu.matmul %301, %302, %cst_139 {dimension_numbers = #tpu.dot_dimension_numbers<[1], [0], [0], [1], [0, 0, 1, 1], [], []>} : vector<16x32xbf16>, vector<32x128xbf16>, vector<16x128xf32> -> vector<16x128xf32>
    %c0_140 = arith.constant 0 : index
    %c0_141 = arith.constant 0 : index
    %304 = vector.load %arg13[%c0_140, %c0_141] : memref<1x128xf32, #tpu.memory_space<vmem>>, vector<1x128xf32>
    %305 = vector.broadcast %304 : vector<1x128xf32> to vector<16x128xf32>
    %306 = arith.addf %303, %305 : vector<16x128xf32>
    %cst_142 = arith.constant 5.000000e-01 : f32
    %307 = vector.broadcast %cst_142 : f32 to vector<16x128xf32>
    %308 = arith.mulf %307, %306 : vector<16x128xf32>
    %cst_143 = arith.constant 4.471500e-02 : f32
    %309 = vector.broadcast %cst_143 : f32 to vector<16x128xf32>
    %310 = arith.mulf %309, %306 : vector<16x128xf32>
    %311 = arith.mulf %310, %306 : vector<16x128xf32>
    %312 = arith.mulf %311, %306 : vector<16x128xf32>
    %313 = arith.addf %306, %312 : vector<16x128xf32>
    %cst_144 = arith.constant 0.797884583 : f32
    %314 = vector.broadcast %cst_144 : f32 to vector<16x128xf32>
    %315 = arith.mulf %314, %313 : vector<16x128xf32>
    %316 = math.tanh %315 : vector<16x128xf32>
    %cst_145 = arith.constant 1.000000e+00 : f32
    %317 = vector.broadcast %cst_145 : f32 to vector<16x128xf32>
    %318 = arith.addf %317, %316 : vector<16x128xf32>
    %319 = arith.mulf %308, %318 : vector<16x128xf32>
    %320 = arith.truncf %319 : vector<16x128xf32> to vector<16x128xbf16>
    %c0_146 = arith.constant 0 : index
    %c0_147 = arith.constant 0 : index
    %321 = vector.load %arg14[%c0_146, %c0_147] : memref<128x32xbf16, #tpu.memory_space<vmem>>, vector<128x32xbf16>
    %cst_148 = arith.constant dense<0.000000e+00> : vector<16x32xf32>
    %322 = tpu.matmul %320, %321, %cst_148 {dimension_numbers = #tpu.dot_dimension_numbers<[1], [0], [0], [1], [0, 0, 1, 1], [], []>} : vector<16x128xbf16>, vector<128x32xbf16>, vector<16x32xf32> -> vector<16x32xf32>
    %c0_149 = arith.constant 0 : index
    %c0_150 = arith.constant 0 : index
    %323 = vector.load %arg15[%c0_149, %c0_150] : memref<1x32xf32, #tpu.memory_space<vmem>>, vector<1x32xf32>
    %324 = vector.broadcast %323 : vector<1x32xf32> to vector<16x32xf32>
    %325 = arith.addf %322, %324 : vector<16x32xf32>
    %326 = arith.addf %276, %325 : vector<16x32xf32>
    %c0_151 = arith.constant 0 : index
    %c0_152 = arith.constant 0 : index
    %327 = vector.load %arg16[%c0_151, %c0_152] : memref<16x32xf32, #tpu.memory_space<vmem>>, vector<16x32xf32>
    tpu.vector_store %arg16[%c0_151, %c0_152], %326 {strides = array<i32>} : memref<16x32xf32, #tpu.memory_space<vmem>>, vector<16x32xf32>,
    return
  }
  func.func @transform_0(%arg0: i32) -> (i32, i32) {
    %c0_i32 = arith.constant 0 : i32
    %c0_i32_0 = arith.constant 0 : i32
    return %arg0, %c0_i32 : i32, i32
  }
  func.func @transform_1(%arg0: i32) -> (i32, i32, i32) {
    %c0_i32 = arith.constant 0 : i32
    %c0_i32_0 = arith.constant 0 : i32
    %c0_i32_1 = arith.constant 0 : i32
    %c0_i32_2 = arith.constant 0 : i32
    return %c0_i32, %c0_i32_0, %c0_i32_1 : i32, i32, i32
  }
  func.func @transform_2(%arg0: i32) -> (i32, i32, i32) {
    %c0_i32 = arith.constant 0 : i32
    %c0_i32_0 = arith.constant 0 : i32
    %c0_i32_1 = arith.constant 0 : i32
    %c0_i32_2 = arith.constant 0 : i32
    return %c0_i32, %c0_i32_0, %c0_i32_1 : i32, i32, i32
  }
  func.func @transform_3(%arg0: i32) -> (i32, i32, i32) {
    %c0_i32 = arith.constant 0 : i32
    %c0_i32_0 = arith.constant 0 : i32
    %c0_i32_1 = arith.constant 0 : i32
    %c0_i32_2 = arith.constant 0 : i32
    return %c0_i32, %c0_i32_0, %c0_i32_1 : i32, i32, i32
  }
  func.func @transform_4(%arg0: i32) -> (i32, i32) {
    %c0_i32 = arith.constant 0 : i32
    %c0_i32_0 = arith.constant 0 : i32
    %c0_i32_1 = arith.constant 0 : i32
    return %c0_i32, %c0_i32_0 : i32, i32
  }
  func.func @transform_5(%arg0: i32) -> (i32, i32) {
    %c0_i32 = arith.constant 0 : i32
    %c0_i32_0 = arith.constant 0 : i32
    %c0_i32_1 = arith.constant 0 : i32
    return %c0_i32, %c0_i32_0 : i32, i32
  }
  func.func @transform_6(%arg0: i32) -> (i32, i32) {
    %c0_i32 = arith.constant 0 : i32
    %c0_i32_0 = arith.constant 0 : i32
    %c0_i32_1 = arith.constant 0 : i32
    return %c0_i32, %c0_i32_0 : i32, i32
  }
  func.func @transform_7(%arg0: i32) -> (i32, i32) {
    %c0_i32 = arith.constant 0 : i32
    %c0_i32_0 = arith.constant 0 : i32
    %c0_i32_1 = arith.constant 0 : i32
    return %c0_i32, %c0_i32_0 : i32, i32
  }
  func.func @transform_8(%arg0: i32) -> (i32, i32) {
    %c0_i32 = arith.constant 0 : i32
    %c0_i32_0 = arith.constant 0 : i32
    %c0_i32_1 = arith.constant 0 : i32
    return %c0_i32, %c0_i32_0 : i32, i32
  }
  func.func @transform_9(%arg0: i32) -> (i32, i32) {
    %c0_i32 = arith.constant 0 : i32
    %c0_i32_0 = arith.constant 0 : i32
    %c0_i32_1 = arith.constant 0 : i32
    return %c0_i32, %c0_i32_0 : i32, i32
  }
  func.func @transform_10(%arg0: i32) -> (i32, i32) {
    %c0_i32 = arith.constant 0 : i32
    %c0_i32_0 = arith.constant 0 : i32
    %c0_i32_1 = arith.constant 0 : i32
    return %c0_i32, %c0_i32_0 : i32, i32
  }
  func.func @transform_11(%arg0: i32) -> (i32, i32) {
    %c0_i32 = arith.constant 0 : i32
    %c0_i32_0 = arith.constant 0 : i32
    %c0_i32_1 = arith.constant 0 : i32
    return %c0_i32, %c0_i32_0 : i32, i32
  }
  func.func @transform_12(%arg0: i32) -> (i32, i32) {
    %c0_i32 = arith.constant 0 : i32
    %c0_i32_0 = arith.constant 0 : i32
    %c0_i32_1 = arith.constant 0 : i32
    return %c0_i32, %c0_i32_0 : i32, i32
  }
  func.func @transform_13(%arg0: i32) -> (i32, i32) {
    %c0_i32 = arith.constant 0 : i32
    %c0_i32_0 = arith.constant 0 : i32
    %c0_i32_1 = arith.constant 0 : i32
    return %c0_i32, %c0_i32_0 : i32, i32
  }
  func.func @transform_14(%arg0: i32) -> (i32, i32) {
    %c0_i32 = arith.constant 0 : i32
    %c0_i32_0 = arith.constant 0 : i32
    %c0_i32_1 = arith.constant 0 : i32
    return %c0_i32, %c0_i32_0 : i32, i32
  }
  func.func @transform_15(%arg0: i32) -> (i32, i32) {
    %c0_i32 = arith.constant 0 : i32
    %c0_i32_0 = arith.constant 0 : i32
    return %arg0, %c0_i32 : i32, i32
  }
  func.func @transform_16(%arg0: i32) -> (i32, i32) {
    %c0_i32 = arith.constant 0 : i32
    %c0_i32_0 = arith.constant 0 : i32
    return %arg0, %c0_i32 : i32, i32
  }
}

</mosaic_0001>

<bundles_post_ra>
// kernel: tpu_custom_call.1
= control target key start
LH: loop header
LB: loop body
LE: loop exit
PB: predicated region body
PF: predicated region fallthrough
CT: control target
= control target key end

     0   :  { %s1964_s0 = inlined_call_operand.vmem [shape: f32[16,32], index: 0, kind: input, shape index: {}]   ;;  %s1965_s1 = inlined_call_operand.vmem [shape: bf16[4,8,32], index: 1, kind: input, shape index: {}]   ;;  %s1966_s2 = inlined_call_operand.vmem [shape: bf16[4,8,32], index: 2, kind: input, shape index: {}]   ;;  %s1967_s3 = inlined_call_operand.vmem [shape: bf16[4,8,32], index: 3, kind: input, shape index: {}]   ;;  %s1968_s4 = inlined_call_operand.vmem [shape: bf16[32,32], index: 4, kind: input, shape index: {}]   ;;  %s1969_s5 = inlined_call_operand.hbm [shape: bf16[32,32], index: 5, kind: input, shape index: {}]   ;;  %s1970_s6 = inlined_call_operand.vmem [shape: f32[1,32], index: 6, kind: input, shape index: {}]   ;;  %s1971_s7 = inlined_call_operand.vmem [shape: f32[1,32], index: 7, kind: input, shape index: {}]   ;;  %s1972_s8 = inlined_call_operand.vmem [shape: f32[1,32], index: 8, kind: input, shape index: {}]   ;;  %s1973_s9 = inlined_call_operand.vmem [shape: f32[1,32], index: 9, kind: input, shape index: {}]   ;;  %s1974_s10 = inlined_call_operand.vmem [shape: f32[1,32], index: 10, kind: input, shape index: {}]   ;;  %s1975_s11 = inlined_call_operand.hbm [shape: bf16[32,128], index: 11, kind: input, shape index: {}]   ;;  %s1976_s12 = inlined_call_operand.vmem [shape: f32[1,128], index: 12, kind: input, shape index: {}]   ;;  %s1977_s13 = inlined_call_operand.vmem [shape: bf16[128,32], index: 13, kind: input, shape index: {}]   ;;  %s1978_s14 = inlined_call_operand.vmem [shape: f32[1,32], index: 14, kind: input, shape index: {}]   ;;  %s1979_s15 = inlined_call_operand.hbm [shape: f32[16,32], index: 15, kind: output, shape index: {0}]   ;;  %s1980_s16 = inlined_call_operand.hbm [shape: f32[2,8], index: 16, kind: output, shape index: {1}]  }
   0x1   :  { %1982 = sst [smem:[#allocation15_spill]] %s1964_s0 }
   0x2   :  { %22 = vsyncpa [#allocation4], 0 }
   0x3   :  { %23 = vsyncpa [#allocation7], 0 }
   0x4   :  { %24 = vsyncpa [#allocation5], 0 }
   0x5   :  { %25 = vsyncpa [#allocation10], 0  ;;  %s40_s23 = sshll.u32 %s1969_s5, 4  ;;  %s1578_s24 = smov [#allocation3]   ;;  %s41_s23 = int_to_ptr.hbm [resolvable:$true] %s40_s23 }
   0x6   :  { %s42_s25 = sshll.u32 %s1578_s24, 4  ;;  %s63_s28 = sshll.u32 %s1975_s11, 4  ;;  %s43_s25 = int_to_ptr.vmem [resolvable:$true] %s42_s25  ;;  %s64_s28 = int_to_ptr.hbm [resolvable:$true] %s63_s28 }
   0x7   :  { %s1579_s29 = smov 64   ;;  %s1580_s30 = smov 4  }
   0x8   :  { %48 = dma.hbm_to_vmem [thread:$0]  %s41_s23, 256, %s43_s25, [#allocation4], %s1579_s29, %s1579_s29, %s1580_s30  }
   0x9   :  { %s1581_s0 = smov [#allocation6]  }
   0xa   :  { %s65_s17 = sshll.u32 %s1581_s0, 4  ;;  %s66_s17 = int_to_ptr.vmem [resolvable:$true] %s65_s17 }
   0xb   :  { %71 = dma.hbm_to_vmem [thread:$0]  %s64_s28, 256, %s66_s17, [#allocation7], %s1579_s29, %s1579_s29, %s1580_s30  }
   0xc   :  { %1570 = dma.done.wait [#allocation4], 256  }
   0xd   :  { %1571 = vsyncadd [#allocation4], 4294967040 }
   0xe   :  { %1572 = dma.done.wait [#allocation7], 256  }
   0xf   :  { %1573 = vsyncadd [#allocation7], 4294967040  ;;  %vm91_vm0 = vcmask 261120   ;;  %s1983_s19 = sld [smem:[#allocation15_spill]]  ;;  %v1582_v4 = vmov 32.0   ;;  %v1389_v21 = vld [vmem:[%s1968_s4 + $0x8] sm:$0xff] }
  0x10   :  { %1420 = vrcp.f32 %v1582_v4  ;;  %v344_v22 = vld [vmem:[%s1967_s3] sm:$0xf]  ;;  %252 = vmatpush.bf16.msra.mxu3 %v1389_v21  ;;  %187 = vmatpush.bf16.msra.mxu0 %v1389_v21  ;;  %vm400_vm8 = vcmask 1043456   ;;  %vm364_vm9 = vcmask 64512   ;;  %vm234_vm13 = vcmask 57344   ;;  %s1584_s30 = smov 16  }
  0x11   :  { %v346_v23 = vsel %vm91_vm0, %v344_v22, 0  ;;  %v1388_v24 = vld [vmem:[%s1968_s4] sm:$0xff]  ;;  %s1585_s0 = smov 24   ;;  %s1587_s5 = smov [#allocation8]  }
  0x12   :  { %355 = vmatpush.bf16.xpose.msra.mxu2 %v346_v23  ;;  %v300_v31 = vld [vmem:[%s1965_s1] sm:$0xf]  ;;  %s1255_s18 = sshll.u32 %s1587_s5, 4  ;;  %s1256_s18 = int_to_ptr.vmem [resolvable:$true] %s1255_s18 }
  0x13   :  { %v306_v32 = vsel %vm91_vm0, %v300_v31, 0  ;;  %v1413_v45 = vld [vmem:[%s1971_s7] ss:$0 sm:$0xff] }
  0x14   :  { %253 = vmatpush.bf16.msra.mxu3 %v1388_v24  ;;  %188 = vmatpush.bf16.msra.mxu0 %v1388_v24  ;;  %v1414_v48 = vld [vmem:[%s1972_s8] ss:$0 sm:$0xff]  ;;  %s1271_s8 = sshll.u32 %s1980_s16, 4  ;;  %s1272_s8 = int_to_ptr.hbm [resolvable:$true] %s1271_s8 }
  0x15   :  { %v1683_v0 = vld [vmem:[%s1983_s19 + $0x8] sm:$0xff]  ;;  %v1688_v1 = vld [vmem:[%s1983_s19] sm:$0xff] }
  0x16   :  { %v95_v2 = vsel %vm91_vm0, %v1683_v0, 0.0  ;;  %v92_v3 = vsel %vm91_vm0, %v1688_v1, 0.0  ;;  %v1421_v5 = vpop.eup %1420 }
  0x17   :  { %96 = vadd.xlane.f32.xlu1 %v95_v2  ;;  %93 = vadd.xlane.f32.xlu0 %v92_v3  ;;  %v99_v6 = vmul.f32 32.0, %v1421_v5  ;;  %vm103_vm1 = vweird.f32 %v1421_v5 }
  0x18   :  { %315 = vmatpush.bf16.xpose.msrb.mxu0 %v306_v32 }
  0x19   :  { %v100_v7 = vsub.f32 1.0, %v99_v6  ;;  %v324_v6 = vld [vmem:[%s1966_s2] sm:$0xf] }
  0x1b   :  { %v101_v8 = vmul.f32 %v1421_v5, %v100_v7  ;;  %v326_v7 = vsel %vm91_vm0, %v324_v6, 0 }
  0x1d   :  { %v102_v9 = vadd.f32 %v1421_v5, %v101_v8 }
  0x1f   :  { %v1694_v10 = vsel %vm103_vm1, %v1421_v5, %v102_v9 }
  0x8a   :  { %v97_v11 = vpop.xlane.xlu1 %96  ;;  %v94_v12 = vpop.xlane.xlu0 %93 }
  0x8b   :  { %v106_v13 = vmul.f32 %v1694_v10, %v97_v11  ;;  %v105_v14 = vmul.f32 %v1694_v10, %v94_v12 }
  0x8d   :  { %v108_v15 = vsub.f32 %v1683_v0, %v106_v13  ;;  %v107_v16 = vsub.f32 %v1688_v1, %v105_v14 }
  0x8f   :  { %v110_v17 = vmul.f32 %v108_v15, %v108_v15  ;;  %v109_v18 = vmul.f32 %v107_v16, %v107_v16 }
  0x91   :  { %v114_v19 = vsel %vm91_vm0, %v110_v17, 0.0  ;;  %v111_v20 = vsel %vm91_vm0, %v109_v18, 0.0 }
  0x92   :  { %115 = vadd.xlane.f32.xlu1 %v114_v19  ;;  %112 = vadd.xlane.f32.xlu0 %v111_v20 }
 0x105   :  { %v116_v25 = vpop.xlane.xlu1 %115  ;;  %v113_v26 = vpop.xlane.xlu0 %112 }
 0x106   :  { %v118_v27 = vmul.f32 %v116_v25, %v1694_v10  ;;  %v117_v28 = vmul.f32 %v113_v26, %v1694_v10 }
 0x108   :  { %v120_v29 = vadd.f32 1e-05, %v118_v27  ;;  %v119_v30 = vadd.f32 1e-05, %v117_v28 }
 0x10a   :  { %1422 = vrsqrt.f32 %v120_v29  ;;  %vm137_vm2 = vweird.f32 %v120_v29  ;;  %vm127_vm6 = vweird.f32 %v119_v30 }
 0x10b   :  { %1424 = vrsqrt.f32 %v119_v30 }
 0x110   :  { %v1423_v33 = vpop.eup %1422 }
 0x111   :  { %v1425_v34 = vpop.eup %1424  ;;  %v132_v35 = vmul.f32 %v1423_v33, %v120_v29  ;;  %vm138_vm3 = vweird.f32 %v1423_v33 }
 0x112   :  { %v122_v36 = vmul.f32 %v1425_v34, %v119_v30  ;;  %vm139_vm4 = vmor %vm137_vm2, %vm138_vm3  ;;  %vm128_vm5 = vweird.f32 %v1425_v34  ;;  %v1308_v30 = vld [vmem:[%s1965_s1 + $0x4] sm:$0xf] }
 0x113   :  { %v133_v37 = vmul.f32 %v1423_v33, %v132_v35  ;;  %vm129_vm7 = vmor %vm127_vm6, %vm128_vm5  ;;  %vm771_vm5 = vcmask 195712   ;;  %vm949_vm6 = vcmask 261312  }
 0x114   :  { %v123_v38 = vmul.f32 %v1425_v34, %v122_v36 }
 0x115   :  { %v134_v39 = vmul.f32 0.5, %v133_v37 }
 0x116   :  { %v124_v40 = vmul.f32 0.5, %v123_v38 }
 0x117   :  { %v135_v41 = vsub.f32 1.5, %v134_v39 }
 0x118   :  { %v125_v42 = vsub.f32 1.5, %v124_v40 }
 0x119   :  { %v136_v43 = vmul.f32 %v1423_v33, %v135_v41  ;;  %v1312_v41 = vld [vmem:[%s1967_s3 + $0x4] sm:$0xf] }
 0x11a   :  { %v126_v44 = vmul.f32 %v1425_v34, %v125_v42 }
 0x11b   :  { %v140_v46 = vsel %vm139_vm4, %v1423_v33, %v136_v43  ;;  %v477_v33 = vsel %vm91_vm0, %v1308_v30, 0  ;;  %vm593_vm4 = vcmask 130112  }
 0x11c   :  { %v130_v47 = vsel %vm129_vm7, %v1425_v34, %v126_v44  ;;  %v142_v49 = vmul.f32 %v140_v46, %v108_v15 }
 0x11d   :  { %v141_v50 = vmul.f32 %v130_v47, %v107_v16 }
 0x11e   :  { %v147_v51 = vmul.f32 %v1413_v45, %v142_v49  ;;  %v519_v49 = vsel %vm91_vm0, %v1312_v41, 0 }
 0x11f   :  { %v146_v52 = vmul.f32 %v1413_v45, %v141_v50 }
 0x120   :  { %v152_v53 = vadd.f32 %v1414_v48, %v147_v51 }
 0x121   :  { %v151_v54 = vadd.f32 %v1414_v48, %v146_v52 }
 0x122   :  { %v154_v55 = vpack.c.bf16 %v152_v53, %v152_v53 }
 0x123   :  { %v153_v56 = vpack.c.bf16 %v151_v54, %v151_v54 }
 0x124   :  { %v237_v57 = vunpack.c.l.b16 %v154_v55  ;;  %v264_v58 = vsel %vm91_vm0, %v154_v55, 0 }
 0x125   :  { %v160_v59 = vunpack.c.l.b16 %v153_v56  ;;  %v199_v60 = vsel %vm91_vm0, %v153_v56, 0  ;;  %273 = vmatpush.bf16.xpose.msrb.mxu3 %v264_v58 }
 0x126   :  { %208 = vmatpush.bf16.xpose.msra.mxu1 %v199_v60  ;;  %v238_v61 = vpack.c.b16 %v237_v57, %v237_v57 }
 0x127   :  { %v1726_v62 = vpack.c.b16 %v237_v57, %v160_v59  ;;  %v161_v63 = vpack.c.b16 %v160_v59, %v160_v59 }
 0x128   :  { %v240_v2 = vshrl.u32 %v238_v61, 16 }
 0x129   :  { %1303 = vmatmul.msk.bf16.vlgmr.msra.gmra.mxu2 %vm91_vm0, %v1726_v62  ;;  %v163_v3 = vshrl.u32 %v161_v63, 16 }
 0x12a   :  { %v242_v4 = vrot.slane %v240_v2, 3 }
 0x12b   :  { %v165_v5 = vrot.slane %v163_v3, 3 }
 0x12c   :  { %1298 = vmatmul.msk.bf16.vlgmr.msra.gmra.mxu3 %vm91_vm0, %v242_v4 }
 0x12d   :  { %1295 = vmatmul.msk.bf16.vlgmr.msra.gmra.mxu0 %vm91_vm0, %v165_v5 }
 0x12e   :  { %335 = vmatpush.bf16.xpose.msrb.mxu1 %v326_v7 }
 0x13d   :  { %1301 = vmatmul.msk.bf16.vlgmr.msrb.gmra.mxu0 %vm91_vm0, %v1726_v62 }
 0x1aa   :  { %v190_v8 = vpop.f32.mrf.mxu0 }
 0x1ab   :  { %v194_v9 = vpack.c.bf16 %v190_v8, %v190_v8 }
 0x1ac   :  { %v357_v11 = vpop.f32.mrf.mxu2 }
 0x1ad   :  { %v362_v12 = vpack.c.bf16 %v357_v11, %v357_v11  ;;  %1296 = vmatmul.msk.bf16.vlgmr.msra.gmra.mxu1 %vm91_vm0, %v194_v9 }
 0x1af   :  { %v402_v13 = vsel %vm400_vm8, %v362_v12, 0  ;;  %v255_v14 = vpop.f32.mrf.mxu3 }
 0x1b0   :  { %v259_v15 = vpack.c.bf16 %v255_v14, %v255_v14  ;;  %411 = vmatpush.bf16.msra.mxu0 %v402_v13 }
 0x1b2   :  { %v192_v16 = vpop.f32.mrf.mxu0  ;;  %1299 = vmatmul.msk.bf16.vlgmr.msrb.gmra.mxu3 %vm91_vm0, %v259_v15 }
 0x1b4   :  { %v359_v17 = vpop.f32.mrf.mxu2 }
 0x1b5   :  { %v363_v18 = vpack.c.bf16 %v359_v17, %v359_v17 }
 0x1b7   :  { %v257_v19 = vpop.f32.mrf.mxu3  ;;  %v456_v20 = vsel %vm400_vm8, %v363_v18, 0 }
 0x1b8   :  { %465 = vmatpush.bf16.msrb.mxu2 %v456_v20 }
 0x1ba   :  { %v317_v37 = vpop.f32.mrf.mxu0 }
 0x1bb   :  { %v322_v42 = vpack.c.bf16 %v317_v37, %v317_v37 }
 0x1bd   :  { %1302 = vmatmul.msk.bf16.vlgmr.msrb.gmra.mxu1 %vm91_vm0, %v1726_v62 }
 0x1c2   :  { %v319_v54 = vpop.f32.mrf.mxu0 }
 0x1c3   :  { %v323_v57 = vpack.c.bf16 %v319_v54, %v319_v54 }
 0x22a   :  { %v210_v21 = vpop.f32.mrf.mxu1 }
 0x22b   :  { %v1297_v22 = vmul.f32 -0.088388346, %v210_v21  ;;  %v1310_v21 = vld [vmem:[%s1966_s2 + $0x4] sm:$0xf] }
 0x22d   :  { %v216_v23 = vmul.f32 1.442695, %v1297_v22  ;;  %v498_v22 = vsel %vm91_vm0, %v1310_v21, 0 }
 0x22e   :  { %507 = vmatpush.bf16.xpose.msrb.mxu0 %v498_v22 }
 0x22f   :  { %1426 = vpow2.f32 %v216_v23 }
 0x232   :  { %v212_v24 = vpop.f32.mrf.mxu1 }
 0x235   :  { %v1427_v25 = vpop.eup %1426  ;;  %v275_v26 = vpop.f32.mrf.mxu3 }
 0x236   :  { %v218_v27 = vadd.f32 1.0, %v1427_v25  ;;  %v1300_v28 = vmul.f32 -0.088388346, %v275_v26 }
 0x238   :  { %1428 = vrcp.f32 %v218_v27  ;;  %v281_v29 = vmul.f32 1.442695, %v1300_v28  ;;  %v230_v43 = vand.u32 2147483648, %v218_v27  ;;  %v228_v47 = vand.u32 2147483647, %v218_v27 }
 0x239   :  { %vm224_vm11 = vweird.f32 %v218_v27 }
 0x23a   :  { %v337_v31 = vpop.f32.mrf.mxu1  ;;  %1430 = vpow2.f32 %v281_v29  ;;  %v231_v52 = vor.u32 1.1754944e-38, %v230_v43  ;;  %vm229_vm14 = vcmp.eq.f32.partialorder %v228_v47, 8.507059e+37  ;;  %v1322_v47 = vld [vmem:[%s1967_s3 + $0x8] sm:$0xf] }
 0x23b   :  { %v342_v32 = vpack.c.bf16 %v337_v31, %v337_v31 }
 0x23d   :  { %v369_v34 = vsel %vm364_vm9, %v342_v32, 0  ;;  %v277_v35 = vpop.f32.mrf.mxu3 }
 0x23e   :  { %v1429_v36 = vpop.eup %1428  ;;  %378 = vmatpush.bf16.xpose.msra.mxu3 %v369_v34 }
 0x23f   :  { %v220_v38 = vmul.f32 %v1429_v36, %v218_v27  ;;  %vm225_vm10 = vweird.f32 %v1429_v36 }
 0x240   :  { %v1431_v39 = vpop.eup %1430  ;;  %vm226_vm12 = vmor %vm224_vm11, %vm225_vm10 }
 0x241   :  { %v221_v40 = vsub.f32 1.0, %v220_v38  ;;  %v283_v44 = vadd.f32 1.0, %v1431_v39 }
 0x242   :  { %v339_v45 = vpop.f32.mrf.mxu1 }
 0x243   :  { %v222_v46 = vmul.f32 %v1429_v36, %v221_v40  ;;  %v343_v48 = vpack.c.bf16 %v339_v45, %v339_v45  ;;  %1432 = vrcp.f32 %v283_v44  ;;  %v295_v60 = vand.u32 2147483648, %v283_v44  ;;  %v1318_v40 = vld [vmem:[%s1965_s1 + $0x8] sm:$0xf] }
 0x244   :  { %v293_v63 = vand.u32 2147483647, %v283_v44  ;;  %vm289_vm1 = vweird.f32 %v283_v44  ;;  %v655_v43 = vsel %vm91_vm0, %v1318_v40, 0 }
 0x245   :  { %v223_v50 = vadd.f32 %v1429_v36, %v222_v46  ;;  %v424_v51 = vsel %vm364_vm9, %v343_v48, 0  ;;  %1304 = vmatmul.msk.bf16.vlgmr.msra.gmra.mxu3 %vm364_vm9, %v322_v42  ;;  %v296_v3 = vor.u32 1.1754944e-38, %v295_v60 }
 0x246   :  { %486 = vmatpush.bf16.xpose.msrb.mxu3 %v477_v33  ;;  %433 = vmatpush.bf16.xpose.msra.mxu1 %v424_v51  ;;  %vm294_vm3 = vcmp.eq.f32.partialorder %v293_v63, 8.507059e+37  ;;  %v697_v51 = vsel %vm91_vm0, %v1322_v47, 0 }
 0x247   :  { %v227_v53 = vsel %vm226_vm12, %v1429_v36, %v223_v50 }
 0x248   :  { %v232_v55 = vsel %vm229_vm14, %v231_v52, %v227_v53 }
 0x249   :  { %235 = vst.msk [vmem:[#allocation9] sm:$0x1] %vm234_vm13, %v232_v55  ;;  %v1433_v56 = vpop.eup %1432  ;;  %v1770_v28 = vperm.slane %v232_v55, 0 }
 0x24a   :  { %v285_v58 = vmul.f32 %v1433_v56, %v283_v44  ;;  %vm290_vm15 = vweird.f32 %v1433_v56 }
 0x24b   :  { %vm291_vm2 = vmor %vm289_vm1, %vm290_vm15 }
 0x24c   :  { %v286_v59 = vsub.f32 1.0, %v285_v58 }
 0x24d   :  { %1306 = vmatmul.msk.bf16.vlgmr.msra.gmra.mxu1 %vm364_vm9, %v323_v57 }
 0x24e   :  { %528 = vmatpush.bf16.xpose.msrb.mxu1 %v519_v49  ;;  %v287_v61 = vmul.f32 %v1433_v56, %v286_v59 }
 0x250   :  { %v288_v2 = vadd.f32 %v1433_v56, %v287_v61 }
 0x252   :  { %v292_v4 = vsel %vm291_vm2, %v1433_v56, %v288_v2 }
 0x253   :  { %v297_v5 = vsel %vm294_vm3, %v296_v3, %v292_v4 }
 0x254   :  { %299 = vst.msk [vmem:[#allocation9 + $0x1] sm:$0x1] %vm234_vm13, %v297_v5  ;;  %v1777_v33 = vperm.slane %v297_v5, 0 }
 0x255   :  { %1309 = vmatmul.msk.bf16.vlgmr.msrb.gmra.mxu3 %vm91_vm0, %v1726_v62 }
 0x25d   :  { %1313 = vmatmul.msk.bf16.vlgmr.msrb.gmra.mxu1 %vm91_vm0, %v1726_v62 }
 0x2c8   :  { %v380_v6 = vpop.f32.mrf.mxu3 }
 0x2c9   :  { %v384_v7 = vmul.f32 0.35355338, %v380_v6 }
 0x2ca   :  { %v435_v8 = vpop.f32.mrf.mxu1 }
 0x2cb   :  { %v385_v9 = vsel %vm364_vm9, %v384_v7, -inf  ;;  %v439_v11 = vmul.f32 0.35355338, %v435_v8  ;;  %v1320_v8 = vld [vmem:[%s1966_s2 + $0x8] sm:$0xf] }
 0x2cc   :  { %386 = vmax.xlane.f32.xlu2 %v385_v9  ;;  %v676_v9 = vsel %vm91_vm0, %v1320_v8, 0 }
 0x2cd   :  { %v440_v14 = vsel %vm364_vm9, %v439_v11, -inf }
 0x2d0   :  { %v382_v12 = vpop.f32.mrf.mxu3 }
 0x2d2   :  { %v437_v13 = vpop.f32.mrf.mxu1 }
 0x2d4   :  { %441 = vmax.xlane.f32.xlu2 %v440_v14 }
 0x2d8   :  { %v488_v45 = vpop.f32.mrf.mxu3 }
 0x2d9   :  { %v493_v49 = vpack.c.bf16 %v488_v45, %v488_v45 }
 0x2da   :  { %v530_v15 = vpop.f32.mrf.mxu1 }
 0x2db   :  { %v535_v16 = vpack.c.bf16 %v530_v15, %v530_v15 }
 0x2dd   :  { %v572_v17 = vsel %vm400_vm8, %v535_v16, 0 }
 0x2de   :  { %581 = vmatpush.bf16.msra.mxu3 %v572_v17 }
 0x2e0   :  { %v490_v53 = vpop.f32.mrf.mxu3 }
 0x2e1   :  { %v494_v54 = vpack.c.bf16 %v490_v53, %v490_v53 }
 0x2e2   :  { %v532_v18 = vpop.f32.mrf.mxu1  ;;  %685 = vmatpush.bf16.xpose.msrb.mxu3 %v676_v9 }
 0x2e3   :  { %v536_v19 = vpack.c.bf16 %v532_v18, %v532_v18 }
 0x2e5   :  { %v630_v20 = vsel %vm400_vm8, %v536_v19, 0 }
 0x2e6   :  { %639 = vmatpush.bf16.msra.mxu1 %v630_v20 }
 0x33f   :  { %v387_v23 = vpop.xlane.xlu2 %386 }
 0x340   :  { %v388_v24 = vsub.f32 %v384_v7, %v387_v23 }
 0x342   :  { %v389_v25 = vmul.f32 1.442695, %v388_v24 }
 0x344   :  { %1434 = vpow2.f32 %v389_v25 }
 0x347   :  { %v442_v26 = vpop.xlane.xlu2 %441 }
 0x348   :  { %v443_v27 = vsub.f32 %v439_v11, %v442_v26 }
 0x34a   :  { %v1772_v29 = vpop.eup %1434  ;;  %v444_v30 = vmul.f32 1.442695, %v443_v27  ;;  %v1328_v27 = vld [vmem:[%s1965_s1 + $0xc] sm:$0xf] }
 0x34b   :  { %v395_v31 = vmul.f32 %v1772_v29, %v1770_v28 }
 0x34c   :  { %1436 = vpow2.f32 %v444_v30 }
 0x34d   :  { %v396_v32 = vpack.c.bf16 %v395_v31, %v395_v31 }
 0x34f   :  { %1305 = vmatmul.msk.bf16.vlgmr.msra.gmra.mxu0 %vm364_vm9, %v396_v32  ;;  %v833_v32 = vsel %vm91_vm0, %v1328_v27, 0 }
 0x352   :  { %v1779_v34 = vpop.eup %1436 }
 0x353   :  { %v450_v35 = vmul.f32 %v1779_v34, %v1777_v33 }
 0x355   :  { %v451_v36 = vpack.c.bf16 %v450_v35, %v450_v35 }
 0x357   :  { %1307 = vmatmul.msk.bf16.vlgmr.msrb.gmra.mxu2 %vm364_vm9, %v451_v36 }
 0x35f   :  { %1311 = vmatmul.msk.bf16.vlgmr.msrb.gmra.mxu0 %vm91_vm0, %v1726_v62 }
 0x3cc   :  { %v1786_v37 = vpop.f32.mrf.mxu0 }
 0x3d4   :  { %v415_v38 = vpop.f32.mrf.mxu0 }
 0x3d5   :  { %v1332_v38 = vld [vmem:[%s1967_s3 + $0xc] sm:$0xf] }
 0x3da   :  { %v1788_v39 = vpop.f32.mrf.mxu2 }
 0x3dc   :  { %v509_v41 = vpop.f32.mrf.mxu0 }
 0x3dd   :  { %v514_v42 = vpack.c.bf16 %v509_v41, %v509_v41 }
 0x3df   :  { %v541_v44 = vsel %vm364_vm9, %v514_v42, 0 }
 0x3e0   :  { %550 = vmatpush.bf16.xpose.msra.mxu2 %v541_v44 }
 0x3e2   :  { %v469_v46 = vpop.f32.mrf.mxu2 }
 0x3e4   :  { %v511_v48 = vpop.f32.mrf.mxu0 }
 0x3e5   :  { %v515_v50 = vpack.c.bf16 %v511_v48, %v511_v48 }
 0x3e7   :  { %v599_v52 = vsel %vm364_vm9, %v515_v50, 0  ;;  %1314 = vmatmul.msk.bf16.vlgmr.msra.gmra.mxu2 %vm364_vm9, %v493_v49 }
 0x3e8   :  { %664 = vmatpush.bf16.xpose.msrb.mxu2 %v655_v43  ;;  %608 = vmatpush.bf16.xpose.msra.mxu0 %v599_v52  ;;  %v875_v43 = vsel %vm91_vm0, %v1332_v38, 0 }
 0x3ef   :  { %1316 = vmatmul.msk.bf16.vlgmr.msra.gmra.mxu0 %vm364_vm9, %v494_v54 }
 0x3f0   :  { %706 = vmatpush.bf16.xpose.msrb.mxu0 %v697_v51 }
 0x3f7   :  { %1319 = vmatmul.msk.bf16.vlgmr.msrb.gmra.mxu2 %vm91_vm0, %v1726_v62 }
 0x3ff   :  { %1323 = vmatmul.msk.bf16.vlgmr.msrb.gmra.mxu0 %vm91_vm0, %v1726_v62 }
 0x46a   :  { %v552_v55 = vpop.f32.mrf.mxu2 }
 0x46b   :  { %v556_v56 = vmul.f32 0.35355338, %v552_v55 }
 0x46c   :  { %v610_v57 = vpop.f32.mrf.mxu0 }
 0x46d   :  { %v614_v58 = vmul.f32 0.35355338, %v610_v57  ;;  %v557_v59 = vsel %vm364_vm9, %v556_v56, -inf }
 0x46e   :  { %558 = vmax.xlane.f32.xlu0 %v557_v59 }
 0x46f   :  { %v615_v60 = vsel %vm364_vm9, %v614_v58, -inf }
 0x470   :  { %616 = vmax.xlane.f32.xlu1 %v615_v60 }
 0x472   :  { %v554_v61 = vpop.f32.mrf.mxu2 }
 0x474   :  { %v612_v63 = vpop.f32.mrf.mxu0 }
 0x475   :  { %v1330_v63 = vld [vmem:[%s1966_s2 + $0xc] sm:$0xf]  ;;  %s1583_s2 = smov 8  }
 0x47a   :  { %v666_v36 = vpop.f32.mrf.mxu2 }
 0x47b   :  { %v671_v41 = vpack.c.bf16 %v666_v36, %v666_v36 }
 0x47c   :  { %v708_v2 = vpop.f32.mrf.mxu0 }
 0x47d   :  { %v713_v3 = vpack.c.bf16 %v708_v2, %v708_v2  ;;  %v854_v2 = vsel %vm91_vm0, %v1330_v63, 0 }
 0x47f   :  { %v750_v4 = vsel %vm400_vm8, %v713_v3, 0 }
 0x480   :  { %759 = vmatpush.bf16.msra.mxu2 %v750_v4 }
 0x482   :  { %v668_v45 = vpop.f32.mrf.mxu2 }
 0x483   :  { %v672_v46 = vpack.c.bf16 %v668_v45, %v668_v45 }
 0x484   :  { %v710_v5 = vpop.f32.mrf.mxu0  ;;  %863 = vmatpush.bf16.xpose.msrb.mxu2 %v854_v2 }
 0x485   :  { %v714_v6 = vpack.c.bf16 %v710_v5, %v710_v5 }
 0x487   :  { %v808_v7 = vsel %vm400_vm8, %v714_v6, 0 }
 0x488   :  { %817 = vmatpush.bf16.msra.mxu0 %v808_v7 }
 0x4e1   :  { %v559_v11 = vpop.xlane.xlu0 %558 }
 0x4e2   :  { %v560_v12 = vsub.f32 %v556_v56, %v559_v11 }
 0x4e3   :  { %v617_v13 = vpop.xlane.xlu1 %616 }
 0x4e4   :  { %v561_v14 = vmul.f32 1.442695, %v560_v12  ;;  %v618_v15 = vsub.f32 %v614_v58, %v617_v13 }
 0x4e6   :  { %1438 = vpow2.f32 %v561_v14  ;;  %v619_v16 = vmul.f32 1.442695, %v618_v15 }
 0x4e8   :  { %1440 = vpow2.f32 %v619_v16 }
 0x4ec   :  { %v1439_v17 = vpop.eup %1438 }
 0x4ed   :  { %v566_v18 = vmul.f32 %v1439_v17, %v1770_v28  ;;  %v563_v55 = vsel %vm364_vm9, %v1439_v17, 0.0  ;;  %v391_v17 = vsel %vm364_vm9, %v1772_v29, 0.0 }
 0x4ee   :  { %v1815_v19 = vpop.eup %1440 }
 0x4ef   :  { %v567_v20 = vpack.c.bf16 %v566_v18, %v566_v18  ;;  %v624_v21 = vmul.f32 %v1815_v19, %v1777_v33 }
 0x4f1   :  { %v625_v22 = vpack.c.bf16 %v624_v21, %v624_v21  ;;  %1315 = vmatmul.msk.bf16.vlgmr.msra.gmra.mxu3 %vm364_vm9, %v567_v20 }
 0x4f3   :  { %1317 = vmatmul.msk.bf16.vlgmr.msra.gmra.mxu1 %vm364_vm9, %v625_v22 }
 0x501   :  { %1321 = vmatmul.msk.bf16.vlgmr.msrb.gmra.mxu3 %vm91_vm0, %v1726_v62 }
 0x570   :  { %v1823_v23 = vpop.f32.mrf.mxu1 }
 0x574   :  { %v1825_v24 = vpop.f32.mrf.mxu3 }
 0x578   :  { %v643_v25 = vpop.f32.mrf.mxu1 }
 0x57c   :  { %v585_v26 = vpop.f32.mrf.mxu3 }
 0x584   :  { %v687_v30 = vpop.f32.mrf.mxu3 }
 0x585   :  { %v692_v31 = vpack.c.bf16 %v687_v30, %v687_v30 }
 0x587   :  { %v719_v35 = vsel %vm364_vm9, %v692_v31, 0 }
 0x588   :  { %728 = vmatpush.bf16.xpose.msrb.mxu1 %v719_v35 }
 0x58c   :  { %v689_v40 = vpop.f32.mrf.mxu3 }
 0x58d   :  { %v693_v42 = vpack.c.bf16 %v689_v40, %v689_v40 }
 0x58f   :  { %v777_v44 = vsel %vm364_vm9, %v693_v42, 0  ;;  %1324 = vmatmul.msk.bf16.vlgmr.msrb.gmra.mxu1 %vm364_vm9, %v671_v41 }
 0x590   :  { %842 = vmatpush.bf16.xpose.msra.mxu1 %v833_v32  ;;  %786 = vmatpush.bf16.xpose.msra.mxu3 %v777_v44 }
 0x597   :  { %1326 = vmatmul.msk.bf16.vlgmr.msra.gmra.mxu3 %vm364_vm9, %v672_v46 }
 0x598   :  { %884 = vmatpush.bf16.xpose.msrb.mxu3 %v875_v43 }
 0x59f   :  { %1329 = vmatmul.msk.bf16.vlgmr.msra.gmra.mxu1 %vm91_vm0, %v1726_v62 }
 0x5a7   :  { %1333 = vmatmul.msk.bf16.vlgmr.msrb.gmra.mxu3 %vm91_vm0, %v1726_v62 }
 0x60c   :  { %v730_v47 = vpop.f32.mrf.mxu1 }
 0x60d   :  { %v734_v48 = vmul.f32 0.35355338, %v730_v47 }
 0x60f   :  { %v735_v49 = vsel %vm364_vm9, %v734_v48, -inf }
 0x610   :  { %736 = vmax.xlane.f32.xlu2 %v735_v49 }
 0x614   :  { %v732_v50 = vpop.f32.mrf.mxu1 }
 0x61a   :  { %v788_v51 = vpop.f32.mrf.mxu3 }
 0x61b   :  { %v792_v52 = vmul.f32 0.35355338, %v788_v51 }
 0x61c   :  { %v844_v38 = vpop.f32.mrf.mxu1 }
 0x61d   :  { %v793_v53 = vsel %vm364_vm9, %v792_v52, -inf  ;;  %v849_v41 = vpack.c.bf16 %v844_v38, %v844_v38 }
 0x61e   :  { %794 = vmax.xlane.f32.xlu0 %v793_v53 }
 0x622   :  { %v790_v54 = vpop.f32.mrf.mxu3 }
 0x623   :  { %v621_v54 = vsel %vm364_vm9, %v1815_v19, 0.0 }
 0x624   :  { %v846_v44 = vpop.f32.mrf.mxu1 }
 0x625   :  { %v850_v45 = vpack.c.bf16 %v846_v44, %v846_v44 }
 0x626   :  { %564 = vadd.xlane.f32.xlu0 %v563_v55 }
 0x62a   :  { %v886_v56 = vpop.f32.mrf.mxu3 }
 0x62b   :  { %v891_v57 = vpack.c.bf16 %v886_v56, %v886_v56 }
 0x62d   :  { %v928_v58 = vsel %vm400_vm8, %v891_v57, 0 }
 0x62e   :  { %937 = vmatpush.bf16.msrb.mxu1 %v928_v58 }
 0x632   :  { %v888_v59 = vpop.f32.mrf.mxu3 }
 0x633   :  { %v892_v60 = vpack.c.bf16 %v888_v59, %v888_v59 }
 0x635   :  { %v986_v61 = vsel %vm400_vm8, %v892_v60, 0 }
 0x636   :  { %995 = vmatpush.bf16.msra.mxu3 %v986_v61 }
 0x683   :  { %v737_v3 = vpop.xlane.xlu2 %736 }
 0x684   :  { %v738_v4 = vsub.f32 %v734_v48, %v737_v3 }
 0x686   :  { %v739_v5 = vmul.f32 1.442695, %v738_v4 }
 0x688   :  { %1442 = vpow2.f32 %v739_v5 }
 0x68e   :  { %v1443_v6 = vpop.eup %1442 }
 0x68f   :  { %v744_v7 = vmul.f32 %v1443_v6, %v1770_v28  ;;  %v741_v49 = vsel %vm364_vm9, %v1443_v6, 0.0  ;;  %v446_v6 = vsel %vm364_vm9, %v1779_v34, 0.0 }
 0x691   :  { %v745_v8 = vpack.c.bf16 %v744_v7, %v744_v7  ;;  %v795_v9 = vpop.xlane.xlu0 %794 }
 0x692   :  { %v796_v11 = vsub.f32 %v792_v52, %v795_v9 }
 0x693   :  { %1325 = vmatmul.msk.bf16.vlgmr.msra.gmra.mxu2 %vm364_vm9, %v745_v8 }
 0x694   :  { %v797_v12 = vmul.f32 1.442695, %v796_v11 }
 0x696   :  { %1444 = vpow2.f32 %v797_v12 }
 0x699   :  { %v565_v18 = vpop.xlane.xlu0 %564 }
 0x69c   :  { %v1445_v13 = vpop.eup %1444 }
 0x69d   :  { %v802_v14 = vmul.f32 %v1445_v13, %v1777_v33  ;;  %v799_v15 = vsel %vm364_vm9, %v1445_v13, 0.0 }
 0x69e   :  { %800 = vadd.xlane.f32.xlu0 %v799_v15 }
 0x69f   :  { %v803_v16 = vpack.c.bf16 %v802_v14, %v802_v14 }
 0x6a1   :  { %1327 = vmatmul.msk.bf16.vlgmr.msra.gmra.mxu0 %vm364_vm9, %v803_v16 }
 0x6a3   :  { %1331 = vmatmul.msk.bf16.vlgmr.msrb.gmra.mxu2 %vm91_vm0, %v1726_v62 }
 0x6a6   :  { %392 = vadd.xlane.f32.xlu0 %v391_v17 }
 0x711   :  { %v801_v20 = vpop.xlane.xlu0 %800 }
 0x712   :  { %1446 = vrcp.f32 %v801_v20 }
 0x716   :  { %v1861_v21 = vpop.f32.mrf.mxu2 }
 0x718   :  { %v1447_v25 = vpop.eup %1446 }
 0x719   :  { %v393_v22 = vpop.xlane.xlu0 %392 }
 0x71a   :  { %1448 = vrcp.f32 %v393_v22 }
 0x71b   :  { %1450 = vrcp.f32 %v565_v18 }
 0x71e   :  { %v763_v26 = vpop.f32.mrf.mxu2  ;;  %v819_v27 = vpop.f32.mrf.mxu0 }
 0x71f   :  { %v1863_v30 = vmul.f32 %v1447_v25, %v819_v27 }
 0x720   :  { %v1449_v31 = vpop.eup %1448 }
 0x721   :  { %v418_v32 = vmul.f32 %v1449_v31, %v1786_v37  ;;  %v1451_v55 = vpop.eup %1450 }
 0x722   :  { %v588_v56 = vmul.f32 %v1451_v55, %v1825_v24 }
 0x723   :  { %419 = vst.msk [vmem:[#allocation2] sm:$0xff] %vm364_vm9, %v418_v32 }
 0x726   :  { %v821_v62 = vpop.f32.mrf.mxu0  ;;  %v865_v29 = vpop.f32.mrf.mxu2 }
 0x727   :  { %v870_v35 = vpack.c.bf16 %v865_v29, %v865_v29  ;;  %v1390_v29 = vld [vmem:[#allocation3] sm:$0xff] }
 0x729   :  { %v897_v36 = vsel %vm364_vm9, %v870_v35, 0 }
 0x72a   :  { %906 = vmatpush.bf16.xpose.msrb.mxu0 %v897_v36 }
 0x72e   :  { %v867_v40 = vpop.f32.mrf.mxu2 }
 0x72f   :  { %v871_v42 = vpack.c.bf16 %v867_v40, %v867_v40 }
 0x731   :  { %v955_v43 = vsel %vm364_vm9, %v871_v42, 0  ;;  %1334 = vmatmul.msk.bf16.vlgmr.msrb.gmra.mxu0 %vm364_vm9, %v849_v41  ;;  %v1415_v42 = vld [vmem:[%s1970_s6] ss:$0 sm:$0xff] }
 0x732   :  { %964 = vmatpush.bf16.xpose.msra.mxu2 %v955_v43 }
 0x739   :  { %1336 = vmatmul.msk.bf16.vlgmr.msra.gmra.mxu2 %vm364_vm9, %v850_v45 }
 0x7ae   :  { %v908_v37 = vpop.f32.mrf.mxu0 }
 0x7af   :  { %v912_v46 = vmul.f32 0.35355338, %v908_v37 }
 0x7b1   :  { %v913_v47 = vsel %vm364_vm9, %v912_v46, -inf }
 0x7b2   :  { %914 = vmax.xlane.f32.xlu2 %v913_v47 }
 0x7b6   :  { %v910_v48 = vpop.f32.mrf.mxu0 }
 0x7ba   :  { %742 = vadd.xlane.f32.xlu2 %v741_v49 }
 0x7bc   :  { %v966_v50 = vpop.f32.mrf.mxu2 }
 0x7bd   :  { %v970_v51 = vmul.f32 0.35355338, %v966_v50 }
 0x7bf   :  { %v971_v52 = vsel %vm364_vm9, %v970_v51, -inf }
 0x7c0   :  { %972 = vmax.xlane.f32.xlu1 %v971_v52 }
 0x7c4   :  { %v968_v53 = vpop.f32.mrf.mxu2 }
 0x7c8   :  { %622 = vadd.xlane.f32.xlu1 %v621_v54 }
 0x7d2   :  { %590 = vrot.lane.b32.xlu2 %v588_v56, %s1583_s2 }
 0x825   :  { %v915_v57 = vpop.xlane.xlu2 %914 }
 0x826   :  { %v916_v58 = vsub.f32 %v912_v46, %v915_v57 }
 0x828   :  { %v917_v59 = vmul.f32 1.442695, %v916_v58  ;;  %v1393_v58 = vld [vmem:[#allocation6 + $0x8] sm:$0xff] }
 0x829   :  { %1138 = vmatpush.bf16.msra.mxu1 %v1393_v58 }
 0x82a   :  { %1452 = vpow2.f32 %v917_v59 }
 0x82d   :  { %v743_v60 = vpop.xlane.xlu2 %742 }
 0x830   :  { %v1453_v61 = vpop.eup %1452 }
 0x831   :  { %v922_v63 = vmul.f32 %v1453_v61, %v1770_v28  ;;  %v919_v2 = vsel %vm364_vm9, %v1453_v61, 0.0  ;;  %v1392_v61 = vld [vmem:[#allocation6] sm:$0xff] }
 0x832   :  { %920 = vadd.xlane.f32.xlu1 %v919_v2  ;;  %1139 = vmatpush.bf16.msra.mxu1 %v1392_v61 }
 0x833   :  { %v923_v3 = vpack.c.bf16 %v922_v63, %v922_v63  ;;  %v973_v19 = vpop.xlane.xlu1 %972 }
 0x834   :  { %v974_v4 = vsub.f32 %v970_v51, %v973_v19 }
 0x835   :  { %1335 = vmatmul.msk.bf16.vlgmr.msrb.gmra.mxu1 %vm364_vm9, %v923_v3  ;;  %v591_v24 = vpop.permute.xlu2 %590 }
 0x836   :  { %v975_v5 = vmul.f32 1.442695, %v974_v4  ;;  %594 = vst.msk [vmem:[#allocation2] sm:$0xff] %vm593_vm4, %v591_v24 }
 0x838   :  { %1454 = vpow2.f32 %v975_v5 }
 0x83a   :  { %447 = vadd.xlane.f32.xlu1 %v446_v6 }
 0x83b   :  { %v623_v7 = vpop.xlane.xlu1 %622 }
 0x83c   :  { %1456 = vrcp.f32 %v623_v7 }
 0x83d   :  { %1458 = vrcp.f32 %v743_v60 }
 0x83e   :  { %v1455_v28 = vpop.eup %1454 }
 0x83f   :  { %v980_v8 = vmul.f32 %v1455_v28, %v1777_v33  ;;  %v977_v9 = vsel %vm364_vm9, %v1455_v28, 0.0 }
 0x840   :  { %978 = vadd.xlane.f32.xlu2 %v977_v9 }
 0x841   :  { %v981_v11 = vpack.c.bf16 %v980_v8, %v980_v8 }
 0x842   :  { %v1457_v12 = vpop.eup %1456 }
 0x843   :  { %1337 = vmatmul.msk.bf16.vlgmr.msra.gmra.mxu3 %vm364_vm9, %v981_v11  ;;  %v646_v13 = vmul.f32 %v1457_v12, %v1823_v23  ;;  %v1459_v14 = vpop.eup %1458 }
 0x844   :  { %v766_v34 = vmul.f32 %v1459_v14, %v1861_v21 }
 0x845   :  { %648 = vrot.lane.b32.xlu0 %v646_v13, %s1583_s2 }
 0x853   :  { %768 = vrot.lane.b32.xlu1 %v766_v34, %s1584_s30 }
 0x858   :  { %826 = vrot.lane.b32.xlu2 %v1863_v30, %s1584_s30 }
 0x8a5   :  { %v921_v33 = vpop.xlane.xlu1 %920 }
 0x8a6   :  { %1460 = vrcp.f32 %v921_v33 }
 0x8ac   :  { %v1461_v16 = vpop.eup %1460 }
 0x8ad   :  { %v448_v15 = vpop.xlane.xlu1 %447 }
 0x8ae   :  { %1462 = vrcp.f32 %v448_v15 }
 0x8b2   :  { %v939_v17 = vpop.f32.mrf.mxu1 }
 0x8b3   :  { %v944_v18 = vmul.f32 %v1461_v16, %v939_v17  ;;  %v979_v20 = vpop.xlane.xlu2 %978  ;;  %v1417_v16 = vld [vmem:[%s1974_s10] ss:$0 sm:$0xff] }
 0x8b4   :  { %v1463_v22 = vpop.eup %1462  ;;  %1464 = vrcp.f32 %v979_v20 }
 0x8b5   :  { %v472_v23 = vmul.f32 %v1463_v22, %v1788_v39  ;;  %946 = vrot.lane.b32.xlu0 %v944_v18, %s1585_s0  ;;  %v1391_v39 = vld [vmem:[#allocation3 + $0x8] sm:$0xff] }
 0x8b6   :  { %1036 = vmatpush.bf16.msra.mxu0 %v1391_v39  ;;  %v1394_v39 = vld [vmem:[%s1977_s13] sm:$0xff] }
 0x8b7   :  { %473 = vst.msk [vmem:[#allocation2 + $0x8] sm:$0xff] %vm364_vm9, %v472_v23  ;;  %v649_v21 = vpop.permute.xlu0 %648 }
 0x8b8   :  { %651 = vst.msk [vmem:[#allocation2 + $0x8] sm:$0xff] %vm593_vm4, %v649_v21 }
 0x8ba   :  { %v941_v25 = vpop.f32.mrf.mxu1  ;;  %v1465_v30 = vpop.eup %1464  ;;  %1037 = vmatpush.bf16.msra.mxu0 %v1390_v29  ;;  %v1418_v29 = vld [vmem:[%s1976_s12] ss:$0 sm:$0xff]  ;;  %s1586_s12 = smov [#allocation9]  }
 0x8bb   :  { %v827_v26 = vpop.permute.xlu2 %826  ;;  %v1401_v25 = vld [vmem:[%s1977_s13 + $0x38] sm:$0xff] }
 0x8bc   :  { %829 = vst.msk [vmem:[#allocation2 + $0x8] sm:$0xff] %vm771_vm5, %v827_v26  ;;  %1233 = vmatpush.bf16.msrb.mxu2 %v1401_v25  ;;  %v1400_v26 = vld [vmem:[%s1977_s13 + $0x30] sm:$0xff] }
 0x8c0   :  { %1234 = vmatpush.bf16.msrb.mxu2 %v1400_v26 }
 0x8c5   :  { %v769_v27 = vpop.permute.xlu1 %768 }
 0x8c6   :  { %772 = vst.msk [vmem:[#allocation2] sm:$0xff] %vm771_vm5, %v769_v27  ;;  %v997_v31 = vpop.f32.mrf.mxu3  ;;  %v1399_v27 = vld [vmem:[%s1977_s13 + $0x28] sm:$0xff] }
 0x8c7   :  { %v1002_v32 = vmul.f32 %v1465_v30, %v997_v31  ;;  %1235 = vmatpush.bf16.msrb.mxu2 %v1399_v27  ;;  %v1398_v30 = vld [vmem:[%s1977_s13 + $0x20] sm:$0xff]  ;;  %v1397_v31 = vld [vmem:[%s1977_s13 + $0x18] sm:$0xff] }
 0x8c9   :  { %1004 = vrot.lane.b32.xlu2 %v1002_v32, %s1585_s0  ;;  %v1396_v32 = vld [vmem:[%s1977_s13 + $0x10] sm:$0xff] }
 0x8cb   :  { %1236 = vmatpush.bf16.msrb.mxu2 %v1398_v30 }
 0x8ce   :  { %v999_v62 = vpop.f32.mrf.mxu3 }
 0x8cf   :  { %1237 = vmatpush.bf16.msrb.mxu2 %v1397_v31  ;;  %v1395_v62 = vld [vmem:[%s1977_s13 + $0x8] sm:$0xff]  ;;  %s1269_s13 = sshll.u32 %s1586_s12, 4  ;;  %s1270_s13 = int_to_ptr.vmem [resolvable:$true] %s1269_s13 }
 0x8d0   :  { %1274 = dma.vmem_to_hbm [thread:$0]  %s1270_s13, 32, %s1272_s8, [#allocation10]  }
 0x8d3   :  { %1238 = vmatpush.bf16.msrb.mxu2 %v1396_v32 }
 0x8d7   :  { %1239 = vmatpush.bf16.msrb.mxu2 %v1395_v62 }
 0x8db   :  { %1240 = vmatpush.bf16.msrb.mxu2 %v1394_v39 }
 0x923   :  { %v1005_v35 = vpop.permute.xlu2 %1004 }
 0x924   :  { %1007 = vst.msk [vmem:[#allocation2 + $0x8] sm:$0xff] %vm949_vm6, %v1005_v35 }
 0x927   :  { %v947_v36 = vpop.permute.xlu0 %946 }
 0x928   :  { %950 = vst.msk [vmem:[#allocation2] sm:$0xff] %vm949_vm6, %v947_v36 }
 0x92b   :  { %v1009_v40 = vld [vmem:[#allocation2 + $0x8] sm:$0xff] }
 0x92f   :  { %v1008_v38 = vld [vmem:[#allocation2] sm:$0xff] }
 0x930   :  { %v1010_v41 = vpack.c.bf16 %v1009_v40, %v1008_v38 }
 0x932   :  { %1346 = vmatmul.msk.bf16.vlgmr.msra.gmra.mxu0 %vm91_vm0, %v1010_v41 }
 0x9af   :  { %v1039_v43 = vpop.f32.mrf.mxu0 }
 0x9b0   :  { %v1044_v44 = vadd.f32 %v1039_v43, %v1688_v1 }
 0x9b2   :  { %v1899_v45 = vadd.f32 %v1415_v42, %v1044_v44 }
 0x9b4   :  { %v1054_v37 = vsel %vm91_vm0, %v1899_v45, 0.0 }
 0x9b5   :  { %1055 = vadd.xlane.f32.xlu1 %v1054_v37 }
 0x9b7   :  { %v1041_v46 = vpop.f32.mrf.mxu0 }
 0x9b8   :  { %v1045_v47 = vadd.f32 %v1041_v46, %v1683_v0 }
 0x9ba   :  { %v1904_v48 = vadd.f32 %v1415_v42, %v1045_v47 }
 0x9bc   :  { %v1057_v49 = vsel %vm91_vm0, %v1904_v48, 0.0 }
 0x9bd   :  { %1058 = vadd.xlane.f32.xlu0 %v1057_v49 }
 0xa28   :  { %v1056_v50 = vpop.xlane.xlu1 %1055 }
 0xa29   :  { %v1060_v51 = vmul.f32 %v1056_v50, %v1694_v10 }
 0xa2b   :  { %v1062_v1 = vsub.f32 %v1899_v45, %v1060_v51 }
 0xa2d   :  { %v1064_v52 = vmul.f32 %v1062_v1, %v1062_v1 }
 0xa2f   :  { %v1066_v53 = vsel %vm91_vm0, %v1064_v52, 0.0 }
 0xa30   :  { %1067 = vadd.xlane.f32.xlu2 %v1066_v53  ;;  %v1059_v54 = vpop.xlane.xlu0 %1058 }
 0xa31   :  { %v1061_v55 = vmul.f32 %v1059_v54, %v1694_v10 }
 0xa33   :  { %v1063_v0 = vsub.f32 %v1904_v48, %v1061_v55 }
 0xa35   :  { %v1065_v56 = vmul.f32 %v1063_v0, %v1063_v0 }
 0xa37   :  { %v1069_v57 = vsel %vm91_vm0, %v1065_v56, 0.0 }
 0xa38   :  { %1070 = vadd.xlane.f32.xlu1 %v1069_v57 }
 0xaa3   :  { %v1068_v59 = vpop.xlane.xlu2 %1067 }
 0xaa4   :  { %v1072_v60 = vmul.f32 %v1068_v59, %v1694_v10  ;;  %v1419_v59 = vld [vmem:[%s1978_s14] ss:$0 sm:$0xff]  ;;  %s1588_s14 = smov 128  }
 0xaa6   :  { %v1074_v63 = vadd.f32 1e-05, %v1072_v60 }
 0xaa8   :  { %1466 = vrsqrt.f32 %v1074_v63  ;;  %vm1082_vm8 = vweird.f32 %v1074_v63 }
 0xaab   :  { %v1071_v2 = vpop.xlane.xlu1 %1070 }
 0xaac   :  { %v1073_v3 = vmul.f32 %v1071_v2, %v1694_v10  ;;  %v1416_v10 = vld [vmem:[%s1973_s9] ss:$0 sm:$0xff]  ;;  %s1257_s9 = sshll.u32 %s1979_s15, 4  ;;  %s1258_s9 = int_to_ptr.hbm [resolvable:$true] %s1257_s9 }
 0xaae   :  { %v1467_v19 = vpop.eup %1466  ;;  %v1075_v4 = vadd.f32 1e-05, %v1073_v3 }
 0xaaf   :  { %v1077_v24 = vmul.f32 %v1467_v19, %v1074_v63  ;;  %vm1083_vm7 = vweird.f32 %v1467_v19 }
 0xab0   :  { %1468 = vrsqrt.f32 %v1075_v4  ;;  %vm1084_vm9 = vmor %vm1082_vm8, %vm1083_vm7  ;;  %vm1092_vm11 = vweird.f32 %v1075_v4 }
 0xab1   :  { %v1078_v5 = vmul.f32 %v1467_v19, %v1077_v24 }
 0xab3   :  { %v1079_v6 = vmul.f32 0.5, %v1078_v5 }
 0xab5   :  { %v1080_v7 = vsub.f32 1.5, %v1079_v6 }
 0xab6   :  { %v1469_v28 = vpop.eup %1468 }
 0xab7   :  { %v1081_v8 = vmul.f32 %v1467_v19, %v1080_v7  ;;  %v1087_v9 = vmul.f32 %v1469_v28, %v1075_v4  ;;  %vm1093_vm10 = vweird.f32 %v1469_v28 }
 0xab8   :  { %vm1094_vm12 = vmor %vm1092_vm11, %vm1093_vm10 }
 0xab9   :  { %v1088_v11 = vmul.f32 %v1469_v28, %v1087_v9  ;;  %v1085_v12 = vsel %vm1084_vm9, %v1467_v19, %v1081_v8 }
 0xaba   :  { %v1096_v34 = vmul.f32 %v1085_v12, %v1062_v1 }
 0xabb   :  { %v1089_v13 = vmul.f32 0.5, %v1088_v11 }
 0xabc   :  { %v1101_v17 = vmul.f32 %v1416_v10, %v1096_v34 }
 0xabd   :  { %v1090_v14 = vsub.f32 1.5, %v1089_v13 }
 0xabe   :  { %v1106_v22 = vadd.f32 %v1417_v16, %v1101_v17 }
 0xabf   :  { %v1091_v33 = vmul.f32 %v1469_v28, %v1090_v14 }
 0xac1   :  { %v1095_v15 = vsel %vm1094_vm12, %v1469_v28, %v1091_v33 }
 0xac2   :  { %v1097_v18 = vmul.f32 %v1095_v15, %v1063_v0 }
 0xac4   :  { %v1102_v20 = vmul.f32 %v1416_v10, %v1097_v18 }
 0xac6   :  { %v1107_v23 = vadd.f32 %v1417_v16, %v1102_v20 }
 0xac8   :  { %v1108_v21 = vpack.c.bf16 %v1107_v23, %v1106_v22 }
 0xaca   :  { %1355 = vmatmul.msk.bf16.vlgmr.msra.gmra.mxu1 %vm91_vm0, %v1108_v21 }
 0xb47   :  { %v1141_v35 = vpop.f32.mrf.mxu1 }
 0xb48   :  { %v1142_v36 = vadd.f32 %v1418_v29, %v1141_v35 }
 0xb4a   :  { %v1148_v38 = vmul.f32 0.044715, %v1142_v36  ;;  %v1146_v54 = vmul.f32 0.5, %v1142_v36 }
 0xb4c   :  { %v1150_v40 = vmul.f32 %v1148_v38, %v1142_v36 }
 0xb4e   :  { %v1152_v41 = vmul.f32 %v1150_v40, %v1142_v36 }
 0xb4f   :  { %v1143_v42 = vpop.f32.mrf.mxu1 }
 0xb50   :  { %v1154_v43 = vadd.f32 %v1152_v41, %v1142_v36  ;;  %v1144_v44 = vadd.f32 %v1418_v29, %v1143_v42 }
 0xb52   :  { %v1149_v37 = vmul.f32 0.044715, %v1144_v44  ;;  %v1156_v46 = vmul.f32 0.7978846, %v1154_v43  ;;  %v1147_v55 = vmul.f32 0.5, %v1144_v44 }
 0xb54   :  { %v1151_v47 = vmul.f32 %v1149_v37, %v1144_v44  ;;  %1470 = vtanh.f32 %v1156_v46 }
 0xb56   :  { %v1153_v49 = vmul.f32 %v1151_v47, %v1144_v44 }
 0xb58   :  { %v1155_v50 = vadd.f32 %v1153_v49, %v1144_v44 }
 0xb5a   :  { %v1157_v51 = vmul.f32 0.7978846, %v1155_v50  ;;  %v1471_v1 = vpop.eup %1470 }
 0xb5b   :  { %v1160_v52 = vadd.f32 1.0, %v1471_v1 }
 0xb5c   :  { %1472 = vtanh.f32 %v1157_v51 }
 0xb5d   :  { %v1162_v56 = vmul.f32 %v1160_v52, %v1146_v54 }
 0xb62   :  { %v1473_v53 = vpop.eup %1472 }
 0xb63   :  { %v1161_v0 = vadd.f32 1.0, %v1473_v53 }
 0xb65   :  { %v1163_v57 = vmul.f32 %v1161_v0, %v1147_v55 }
 0xb67   :  { %v1164_v58 = vpack.c.bf16 %v1163_v57, %v1162_v56 }
 0xb69   :  { %1241 = vmatmul.bf16.vlgmr.msrb.gmra.mxu2 %v1164_v58 }
 0xbec   :  { %v1242_v60 = vpop.f32.mrf.mxu2 }
 0xbed   :  { %v1243_v61 = vadd.f32 %v1419_v59, %v1242_v60 }
 0xbef   :  { %v1247_v63 = vadd.f32 %v1243_v61, %v1899_v45 }
 0xbf1   :  { %1249 = vst.msk [vmem:[#allocation8] sm:$0xff] %vm91_vm0, %v1247_v63 }
 0xbf4   :  { %v1244_v2 = vpop.f32.mrf.mxu2 }
 0xbf5   :  { %v1245_v3 = vadd.f32 %v1419_v59, %v1244_v2 }
 0xbf7   :  { %v1248_v19 = vadd.f32 %v1245_v3, %v1904_v48 }
 0xbf9   :  { %1250 = vst.msk [vmem:[#allocation8 + $0x8] sm:$0xff] %vm91_vm0, %v1248_v19 }
 0xbfa   :  { %1263 = dma.vmem_to_hbm [thread:$0]  %s1256_s18, 256, %s1258_s9, [#allocation5], %s1588_s14, %s1588_s14, %s1583_s2  }
 0xbfb   :  { %1574 = dma.done.wait [#allocation5], 256  }
 0xbfc   :  { %1575 = vsyncadd [#allocation5], 4294967040 }
 0xbfd   :  { %1576 = dma.done.wait [#allocation10], 32  }
 0xbfe   :  { %1577 = vsyncadd [#allocation10], 4294967264 }
 0xbff   :  { %1283 = vsyncpa [#allocation4], 1 }
 0xc00   :  { %1284 = vsyncpa [#allocation7], 1 }
 0xc01   :  { %1285 = vsyncpa [#allocation5], 1 }
 0xc02   :  { %1286 = vsyncpa [#allocation10], 1 }

</bundles_post_ra>
